<compile_context>
chip_gen: v6e
topology: v6e:2x2x1
jax: 0.10.0
libtpu: 0.0.40
codegen_flags: <defaults>
</compile_context>

<pallas_src>
import jax
import jax.numpy as jnp
from jax.experimental import pallas as pl
from jax.experimental.pallas import tpu as pltpu


# ----------------------------- model sizes ---------------------------------
B = 2            # batch
T = 8            # trg_len  (decoder runs T-1 steps)
S = 8            # src_len
E = 32           # emb_dim
HE = 32          # enc_hidden_dim
H = 32           # dec_hidden_dim
V = 16           # output_dim (vocab)
L = 2            # n_layers (kernel below is written for L == 2)
TM1 = T - 1


# ------------------------------- kernel ------------------------------------
def decoder_kernel(
    emb_ref,            # [(T-1)*B, E]  time-major embedded teacher-forced inputs
    enc_ref,            # [B, S, He]    encoder outputs
    h0_ref, c0_ref,     # [L, B, H]     initial hidden / cell state
    wah_ref, wae_ref,   # [H, H], [He, H]   attention Linear split over concat
    ba_ref, v_ref,      # [1, H], [1, H]
    wih0e_ref,          # [E, 4H]   layer-0 LSTM input weight (emb part)
    wih0c_ref,          # [He, 4H]  layer-0 LSTM input weight (context part)
    whh0_ref,           # [H, 4H]   layer-0 LSTM recurrent weight
    b0_ref,             # [1, 4H]
    w1_ref, b1_ref,     # [2H, 4H], [1, 4H]   fused layer-1 LSTM weights
    wfc_ref, bfc_ref,   # [H, V], [1, V]
    out_ref,            # [(T-1)*B, V]   time-major logits (re-laid-out in wrapper)
    hN_ref, cN_ref,     # [L, B, H]
):
    enc = enc_ref[...]                                          # [B, S, He]
    enc_flat = enc.reshape(B * S, HE)

    # ---- time-invariant projections (all off the serial recurrence) ----
    enc_proj = jnp.dot(enc_flat, wae_ref[...],
                       preferred_element_type=jnp.float32
                       ).reshape(B, S, H) + ba_ref[...]          # [B, S, H]
    enc_c = jnp.dot(enc_flat, wih0c_ref[...],
                    preferred_element_type=jnp.float32
                    ).reshape(B, S, 4 * H)                       # [B, S, 4H]
    # emb contribution to layer-0 gates; b0 folded in exactly once here.
    emb_proj = jnp.dot(emb_ref[...], wih0e_ref[...],
                       preferred_element_type=jnp.float32) + b0_ref[...]   # [(T-1)*B, 4H]

    # ---- hoisted broadcasts / weight loads ----
    v_b = jnp.broadcast_to(v_ref[...].reshape(1, 1, H), (B, S, H))
    b1_b = jnp.broadcast_to(b1_ref[...], (B, 4 * H))
    wah = wah_ref[...]
    whh0 = whh0_ref[...]
    w1 = w1_ref[...]

    # recurrent state kept as values (no per-step scratch copies)
    h0v = h0_ref[0]
    h1v = h0_ref[1]
    c0v = c0_ref[0]
    c1v = c0_ref[1]

    h1_steps = []
    for t in range(TM1):                                        # fully unrolled, static t
        # ------------------------- attention --------------------------------
        hid_proj = jnp.dot(h1v, wah, preferred_element_type=jnp.float32)     # [B, H]
        energy = jnp.tanh(enc_proj + hid_proj[:, None, :])                   # [B, S, H]
        score = jnp.sum(energy * v_b, axis=-1)                               # [B, S]
        # no max-subtraction: energy in [-1,1] => |score| <= sum|v|, exp is safe in f32
        e = jnp.exp(score)
        inv_denom = pl.reciprocal(jnp.sum(e, axis=-1, keepdims=True), approx=True)
        attn_w = e * inv_denom                                                # softmax over S

        # context folded into gate space: (sum_s a_s*enc_s) @ Wih0_c == sum_s a_s*enc_c_s
        ctx_gates = jnp.sum(attn_w[:, :, None] * enc_c, axis=1)              # [B, 4H]

        # -------------------- LSTM layer 0 (gate order i,f,g,o) --------------
        gates0 = (emb_proj[t * B:(t + 1) * B, :] + ctx_gates
                  + jnp.dot(h0v, whh0, preferred_element_type=jnp.float32))  # [B, 4H]
        sg0 = jax.nn.sigmoid(gates0)                                         # full-vreg EUP
        tg0 = jnp.tanh(gates0)
        c0v = sg0[:, H:2 * H] * c0v + sg0[:, 0:H] * tg0[:, 2 * H:3 * H]
        h0v = sg0[:, 3 * H:4 * H] * jnp.tanh(c0v)

        # -------------------- LSTM layer 1 (fused gates) ---------------------
        x1 = jnp.concatenate([h0v, h1v], axis=-1)                            # [B, 2H]
        gates1 = jnp.dot(x1, w1, preferred_element_type=jnp.float32) + b1_b  # [B, 4H]
        sg1 = jax.nn.sigmoid(gates1)
        tg1 = jnp.tanh(gates1)
        c1v = sg1[:, H:2 * H] * c1v + sg1[:, 0:H] * tg1[:, 2 * H:3 * H]
        h1v = sg1[:, 3 * H:4 * H] * jnp.tanh(c1v)

        h1_steps.append(h1v)                                                 # fc_out deferred

    # ---------------- deferred fc_out: one matmul, one store -----------------
    h1_all = jnp.concatenate(h1_steps, axis=0)                               # [(T-1)*B, H]
    pred_all = jnp.dot(h1_all, wfc_ref[...],
                       preferred_element_type=jnp.float32) + bfc_ref[...]    # [(T-1)*B, V]
    out_ref[...] = pred_all

    hN_ref[0] = h0v
    hN_ref[1] = h1v
    cN_ref[0] = c0v
    cN_ref[1] = c1v


# ------------------------------ wrapper -------------------------------------
@jax.jit
def decoder_forward(trg, h0, c0, enc_out, params):
    """Pallas implementation of Decoder.forward (lstm, teacher_forcing=True)."""
    # Embedding lookup (glue) for trg[:, 0:T-1]; dropout p=0 -> identity.
    emb_tf = params["W_emb"][trg[:, :-1]]                        # [B, T-1, E]
    # Time-major flat layout so step t occupies rows [t*B, (t+1)*B) in emb_proj.
    emb_tmajor = jnp.transpose(emb_tf, (1, 0, 2)).reshape(TM1 * B, E)

    # Fuse layer-1 input/recurrent weights once (XLA concat, outside the hot loop).
    w_rnn1 = jnp.concatenate([params["Wih1"], params["Whh1"]], axis=0)  # [2H, 4H]

    inputs = (
        emb_tmajor, enc_out, h0, c0,
        params["W_attn_h"], params["W_attn_e"], params["b_attn"], params["v"],
        params["Wih0_e"], params["Wih0_c"], params["Whh0"], params["b0"],
        w_rnn1, params["b1"],
        params["Wfc"], params["bfc"],
    )

    vmem_spec = pl.BlockSpec(memory_space=pltpu.MemorySpace.VMEM)

    out_flat, h_n, c_n = pl.pallas_call(
        decoder_kernel,
        out_shape=(
            jax.ShapeDtypeStruct((TM1 * B, V), jnp.float32),
            jax.ShapeDtypeStruct((L, B, H), jnp.float32),
            jax.ShapeDtypeStruct((L, B, H), jnp.float32),
        ),
        in_specs=[vmem_spec] * len(inputs),
        out_specs=(vmem_spec, vmem_spec, vmem_spec),
    )(*inputs)

    # Re-layout to PyTorch order [B, T-1, V] (cheap XLA transpose, off the kernel).
    outputs = out_flat.reshape(TM1, B, V).transpose(1, 0, 2)
    return outputs, (h_n, c_n)


# --------------------------- pure-JAX reference ------------------------------
def decoder_reference(trg, h0, c0, enc_out, p):
    h = [h0[0], h0[1]]
    c = [c0[0], c0[1]]
    outs = []
    input_t = trg[:, 0]
    for t in range(1, T):
        emb = p["W_emb"][input_t]                                           # [B, E]
        h_top = h[L - 1]
        energy = jnp.tanh(enc_out @ p["W_attn_e"]
                          + (h_top @ p["W_attn_h"])[:, None, :]
                          + p["b_attn"])                                    # [B, S, H]
        score = jnp.sum(energy * p["v"], axis=-1)                           # [B, S]
        attn_w = jax.nn.softmax(score, axis=-1)
        context = jnp.sum(attn_w[:, :, None] * enc_out, axis=1)             # [B, He]

        gates0 = emb @ p["Wih0_e"] + context @ p["Wih0_c"] + h[0] @ p["Whh0"] + p["b0"]
        i0 = jax.nn.sigmoid(gates0[:, 0 * H:1 * H])
        f0 = jax.nn.sigmoid(gates0[:, 1 * H:2 * H])
        g0 = jnp.tanh(gates0[:, 2 * H:3 * H])
        o0 = jax.nn.sigmoid(gates0[:, 3 * H:4 * H])
        c[0] = f0 * c[0] + i0 * g0
        h[0] = o0 * jnp.tanh(c[0])

        gates1 = h[0] @ p["Wih1"] + h[1] @ p["Whh1"] + p["b1"]
        i1 = jax.nn.sigmoid(gates1[:, 0 * H:1 * H])
        f1 = jax.nn.sigmoid(gates1[:, 1 * H:2 * H])
        g1 = jnp.tanh(gates1[:, 2 * H:3 * H])
        o1 = jax.nn.sigmoid(gates1[:, 3 * H:4 * H])
        c[1] = f1 * c[1] + i1 * g1
        h[1] = o1 * jnp.tanh(c[1])

        pred = h[1] @ p["Wfc"] + p["bfc"]
        outs.append(pred)
        input_t = trg[:, t]                                                  # teacher forcing
    return jnp.stack(outs, axis=1), (jnp.stack(h, 0), jnp.stack(c, 0))


# --------------------------------- main --------------------------------------
if __name__ == "__main__":
    key = jax.random.PRNGKey(0)
    ks = jax.random.split(key, 20)
    sc = 0.1

    params = {
        "W_emb":    jax.random.normal(ks[0], (V, E), jnp.float32) * sc,
        "W_attn_h": jax.random.normal(ks[1], (H, H), jnp.float32) * sc,
        "W_attn_e": jax.random.normal(ks[2], (HE, H), jnp.float32) * sc,
        "b_attn":   jax.random.normal(ks[3], (1, H), jnp.float32) * sc,
        "v":        jax.random.normal(ks[4], (1, H), jnp.float32) * sc,
        "Wih0_e":   jax.random.normal(ks[5], (E, 4 * H), jnp.float32) * sc,
        "Wih0_c":   jax.random.normal(ks[6], (HE, 4 * H), jnp.float32) * sc,
        "Whh0":     jax.random.normal(ks[7], (H, 4 * H), jnp.float32) * sc,
        "b0":       jax.random.normal(ks[8], (1, 4 * H), jnp.float32) * sc,
        "Wih1":     jax.random.normal(ks[9], (H, 4 * H), jnp.float32) * sc,
        "Whh1":     jax.random.normal(ks[10], (H, 4 * H), jnp.float32) * sc,
        "b1":       jax.random.normal(ks[11], (1, 4 * H), jnp.float32) * sc,
        "Wfc":      jax.random.normal(ks[12], (H, V), jnp.float32) * sc,
        "bfc":      jax.random.normal(ks[13], (1, V), jnp.float32) * sc,
    }

    trg = jax.random.randint(ks[14], (B, T), 0, V, dtype=jnp.int32)
    h0 = jax.random.normal(ks[15], (L, B, H), jnp.float32) * sc
    c0 = jax.random.normal(ks[16], (L, B, H), jnp.float32) * sc
    enc_out = jax.random.normal(ks[17], (B, S, HE), jnp.float32) * 0.5

    outputs, (h_n, c_n) = decoder_forward(trg, h0, c0, enc_out, params)
    jax.block_until_ready(outputs)
    jax.block_until_ready(h_n)
    jax.block_until_ready(c_n)

    ref_out, (ref_h, ref_c) = decoder_reference(trg, h0, c0, enc_out, params)

    assert outputs.shape == (B, T - 1, V)
    assert h_n.shape == (L, B, H) and c_n.shape == (L, B, H)
    assert float(jnp.max(jnp.abs(outputs - ref_out))) < 1e-2
    assert float(jnp.max(jnp.abs(h_n - ref_h))) < 1e-2
    assert float(jnp.max(jnp.abs(c_n - ref_c))) < 1e-2

    print("KERNEL_OK")
</pallas_src>

<mosaic_0001>
module attributes {stable_mosaic.version = 11 : i64} {
  func.func @decoder_kernel(%arg0: memref<14x32xf32, #tpu.memory_space<vmem>>, %arg1: memref<2x8x32xf32, #tpu.memory_space<vmem>>, %arg2: memref<2x2x32xf32, #tpu.memory_space<vmem>>, %arg3: memref<2x2x32xf32, #tpu.memory_space<vmem>>, %arg4: memref<32x32xf32, #tpu.memory_space<vmem>>, %arg5: memref<32x32xf32, #tpu.memory_space<vmem>>, %arg6: memref<1x32xf32, #tpu.memory_space<vmem>>, %arg7: memref<1x32xf32, #tpu.memory_space<vmem>>, %arg8: memref<32x128xf32, #tpu.memory_space<vmem>>, %arg9: memref<32x128xf32, #tpu.memory_space<vmem>>, %arg10: memref<32x128xf32, #tpu.memory_space<vmem>>, %arg11: memref<1x128xf32, #tpu.memory_space<vmem>>, %arg12: memref<64x128xf32, #tpu.memory_space<vmem>>, %arg13: memref<1x128xf32, #tpu.memory_space<vmem>>, %arg14: memref<32x16xf32, #tpu.memory_space<vmem>>, %arg15: memref<1x16xf32, #tpu.memory_space<vmem>>, %arg16: memref<14x16xf32, #tpu.memory_space<vmem>>, %arg17: memref<2x2x32xf32, #tpu.memory_space<vmem>>, %arg18: memref<2x2x32xf32, #tpu.memory_space<vmem>>) attributes {dimension_semantics = [], scalar_prefetch = 0 : i64, scratch_operands = 0 : i64, tpu.core_type = #tpu.core_type<tc>} {
    %c0 = arith.constant 0 : index
    %c0_0 = arith.constant 0 : index
    %c0_1 = arith.constant 0 : index
    %0 = vector.load %arg1[%c0, %c0_0, %c0_1] : memref<2x8x32xf32, #tpu.memory_space<vmem>>, vector<2x8x32xf32>
    %1 = vector.shape_cast %0 : vector<2x8x32xf32> to vector<16x32xf32>
    %c0_2 = arith.constant 0 : index
    %c0_3 = arith.constant 0 : index
    %2 = vector.load %arg5[%c0_2, %c0_3] : memref<32x32xf32, #tpu.memory_space<vmem>>, vector<32x32xf32>
    %cst = arith.constant dense<0.000000e+00> : vector<16x32xf32>
    %3 = tpu.matmul %1, %2, %cst {dimension_numbers = #tpu.dot_dimension_numbers<[1], [0], [0], [1], [0, 0, 1, 1], [], []>} : vector<16x32xf32>, vector<32x32xf32>, vector<16x32xf32> -> vector<16x32xf32>
    %4 = vector.shape_cast %3 : vector<16x32xf32> to vector<2x8x32xf32>
    %c0_4 = arith.constant 0 : index
    %c0_5 = arith.constant 0 : index
    %5 = vector.load %arg6[%c0_4, %c0_5] : memref<1x32xf32, #tpu.memory_space<vmem>>, vector<1x32xf32>
    %6 = vector.shape_cast %5 : vector<1x32xf32> to vector<1x1x32xf32>
    %7 = vector.broadcast %6 : vector<1x1x32xf32> to vector<2x8x32xf32>
    %8 = arith.addf %4, %7 : vector<2x8x32xf32>
    %c0_6 = arith.constant 0 : index
    %c0_7 = arith.constant 0 : index
    %9 = vector.load %arg9[%c0_6, %c0_7] : memref<32x128xf32, #tpu.memory_space<vmem>>, vector<32x128xf32>
    %cst_8 = arith.constant dense<0.000000e+00> : vector<16x128xf32>
    %10 = tpu.matmul %1, %9, %cst_8 {dimension_numbers = #tpu.dot_dimension_numbers<[1], [0], [0], [1], [0, 0, 1, 1], [], []>} : vector<16x32xf32>, vector<32x128xf32>, vector<16x128xf32> -> vector<16x128xf32>
    %11 = vector.shape_cast %10 : vector<16x128xf32> to vector<2x8x128xf32>
    %c0_9 = arith.constant 0 : index
    %c0_10 = arith.constant 0 : index
    %12 = vector.load %arg0[%c0_9, %c0_10] : memref<14x32xf32, #tpu.memory_space<vmem>>, vector<14x32xf32>
    %c0_11 = arith.constant 0 : index
    %c0_12 = arith.constant 0 : index
    %13 = vector.load %arg8[%c0_11, %c0_12] : memref<32x128xf32, #tpu.memory_space<vmem>>, vector<32x128xf32>
    %cst_13 = arith.constant dense<0.000000e+00> : vector<14x128xf32>
    %14 = tpu.matmul %12, %13, %cst_13 {dimension_numbers = #tpu.dot_dimension_numbers<[1], [0], [0], [1], [0, 0, 1, 1], [], []>} : vector<14x32xf32>, vector<32x128xf32>, vector<14x128xf32> -> vector<14x128xf32>
    %c0_14 = arith.constant 0 : index
    %c0_15 = arith.constant 0 : index
    %15 = vector.load %arg11[%c0_14, %c0_15] : memref<1x128xf32, #tpu.memory_space<vmem>>, vector<1x128xf32>
    %16 = vector.broadcast %15 : vector<1x128xf32> to vector<14x128xf32>
    %17 = arith.addf %14, %16 : vector<14x128xf32>
    %c0_16 = arith.constant 0 : index
    %c0_17 = arith.constant 0 : index
    %18 = vector.load %arg7[%c0_16, %c0_17] : memref<1x32xf32, #tpu.memory_space<vmem>>, vector<1x32xf32>
    %19 = vector.shape_cast %18 : vector<1x32xf32> to vector<1x1x32xf32>
    %20 = vector.shape_cast %19 : vector<1x1x32xf32> to vector<1x1x32xf32>
    %21 = vector.broadcast %20 : vector<1x1x32xf32> to vector<2x8x32xf32>
    %c0_18 = arith.constant 0 : index
    %c0_19 = arith.constant 0 : index
    %22 = vector.load %arg13[%c0_18, %c0_19] : memref<1x128xf32, #tpu.memory_space<vmem>>, vector<1x128xf32>
    %23 = vector.shape_cast %22 : vector<1x128xf32> to vector<1x128xf32>
    %24 = vector.broadcast %23 : vector<1x128xf32> to vector<2x128xf32>
    %c0_20 = arith.constant 0 : index
    %c0_21 = arith.constant 0 : index
    %25 = vector.load %arg4[%c0_20, %c0_21] : memref<32x32xf32, #tpu.memory_space<vmem>>, vector<32x32xf32>
    %c0_22 = arith.constant 0 : index
    %c0_23 = arith.constant 0 : index
    %26 = vector.load %arg10[%c0_22, %c0_23] : memref<32x128xf32, #tpu.memory_space<vmem>>, vector<32x128xf32>
    %c0_24 = arith.constant 0 : index
    %c0_25 = arith.constant 0 : index
    %27 = vector.load %arg12[%c0_24, %c0_25] : memref<64x128xf32, #tpu.memory_space<vmem>>, vector<64x128xf32>
    %c0_26 = arith.constant 0 : index
    %c0_27 = arith.constant 0 : index
    %c0_28 = arith.constant 0 : index
    %28 = vector.load %arg2[%c0_26, %c0_27, %c0_28] : memref<2x2x32xf32, #tpu.memory_space<vmem>>, vector<1x2x32xf32>
    %29 = vector.shape_cast %28 : vector<1x2x32xf32> to vector<2x32xf32>
    %c1 = arith.constant 1 : index
    %c0_29 = arith.constant 0 : index
    %c0_30 = arith.constant 0 : index
    %30 = vector.load %arg2[%c1, %c0_29, %c0_30] : memref<2x2x32xf32, #tpu.memory_space<vmem>>, vector<1x2x32xf32>
    %31 = vector.shape_cast %30 : vector<1x2x32xf32> to vector<2x32xf32>
    %c0_31 = arith.constant 0 : index
    %c0_32 = arith.constant 0 : index
    %c0_33 = arith.constant 0 : index
    %32 = vector.load %arg3[%c0_31, %c0_32, %c0_33] : memref<2x2x32xf32, #tpu.memory_space<vmem>>, vector<1x2x32xf32>
    %33 = vector.shape_cast %32 : vector<1x2x32xf32> to vector<2x32xf32>
    %c1_34 = arith.constant 1 : index
    %c0_35 = arith.constant 0 : index
    %c0_36 = arith.constant 0 : index
    %34 = vector.load %arg3[%c1_34, %c0_35, %c0_36] : memref<2x2x32xf32, #tpu.memory_space<vmem>>, vector<1x2x32xf32>
    %35 = vector.shape_cast %34 : vector<1x2x32xf32> to vector<2x32xf32>
    %cst_37 = arith.constant dense<0.000000e+00> : vector<2x32xf32>
    %36 = tpu.matmul %31, %25, %cst_37 {dimension_numbers = #tpu.dot_dimension_numbers<[1], [0], [0], [1], [0, 0, 1, 1], [], []>} : vector<2x32xf32>, vector<32x32xf32>, vector<2x32xf32> -> vector<2x32xf32>
    %37 = vector.shape_cast %36 : vector<2x32xf32> to vector<2x1x32xf32>
    %38 = vector.broadcast %37 : vector<2x1x32xf32> to vector<2x8x32xf32>
    %39 = arith.addf %8, %38 : vector<2x8x32xf32>
    %40 = math.tanh %39 : vector<2x8x32xf32>
    %41 = arith.mulf %40, %21 : vector<2x8x32xf32>
    %cst_38 = arith.constant dense<0.000000e+00> : vector<2x8xf32>
    %42 = vector.multi_reduction <add>, %41, %cst_38 [2] : vector<2x8x32xf32> to vector<2x8xf32>
    %43 = math.exp %42 : vector<2x8xf32>
    %cst_39 = arith.constant dense<0.000000e+00> : vector<2xf32>
    %44 = vector.multi_reduction <add>, %43, %cst_39 [1] : vector<2x8xf32> to vector<2xf32>
    %45 = vector.shape_cast %44 : vector<2xf32> to vector<2x1xf32>
    %46 = tpu.reciprocal %45 {approx = true} : vector<2x1xf32> -> vector<2x1xf32>
    %47 = vector.broadcast %46 : vector<2x1xf32> to vector<2x8xf32>
    %48 = arith.mulf %43, %47 : vector<2x8xf32>
    %49 = vector.shape_cast %48 : vector<2x8xf32> to vector<2x8x1xf32>
    %50 = vector.broadcast %49 : vector<2x8x1xf32> to vector<2x8x128xf32>
    %51 = arith.mulf %50, %11 : vector<2x8x128xf32>
    %cst_40 = arith.constant dense<0.000000e+00> : vector<2x128xf32>
    %52 = vector.multi_reduction <add>, %51, %cst_40 [1] : vector<2x8x128xf32> to vector<2x128xf32>
    %53 = vector.extract_strided_slice %17 {offsets = [0, 0], sizes = [2, 128], strides = [1, 1]} : vector<14x128xf32> to vector<2x128xf32>
    %54 = arith.addf %53, %52 : vector<2x128xf32>
    %cst_41 = arith.constant dense<0.000000e+00> : vector<2x128xf32>
    %55 = tpu.matmul %29, %26, %cst_41 {dimension_numbers = #tpu.dot_dimension_numbers<[1], [0], [0], [1], [0, 0, 1, 1], [], []>} : vector<2x32xf32>, vector<32x128xf32>, vector<2x128xf32> -> vector<2x128xf32>
    %56 = arith.addf %54, %55 : vector<2x128xf32>
    %57 = arith.negf %56 : vector<2x128xf32>
    %58 = math.exp %57 : vector<2x128xf32>
    %cst_42 = arith.constant 1.000000e+00 : f32
    %59 = vector.broadcast %cst_42 : f32 to vector<2x128xf32>
    %60 = arith.addf %59, %58 : vector<2x128xf32>
    %61 = arith.divf %59, %60 : vector<2x128xf32>
    %62 = math.tanh %56 : vector<2x128xf32>
    %63 = vector.extract_strided_slice %61 {offsets = [0, 32], sizes = [2, 32], strides = [1, 1]} : vector<2x128xf32> to vector<2x32xf32>
    %64 = arith.mulf %63, %33 : vector<2x32xf32>
    %65 = vector.extract_strided_slice %61 {offsets = [0, 0], sizes = [2, 32], strides = [1, 1]} : vector<2x128xf32> to vector<2x32xf32>
    %66 = vector.extract_strided_slice %62 {offsets = [0, 64], sizes = [2, 32], strides = [1, 1]} : vector<2x128xf32> to vector<2x32xf32>
    %67 = arith.mulf %65, %66 : vector<2x32xf32>
    %68 = arith.addf %64, %67 : vector<2x32xf32>
    %69 = vector.extract_strided_slice %61 {offsets = [0, 96], sizes = [2, 32], strides = [1, 1]} : vector<2x128xf32> to vector<2x32xf32>
    %70 = math.tanh %68 : vector<2x32xf32>
    %71 = arith.mulf %69, %70 : vector<2x32xf32>
    %72 = tpu.concatenate %71, %31 in 1 : vector<2x32xf32>, vector<2x32xf32> -> vector<2x64xf32>
    %cst_43 = arith.constant dense<0.000000e+00> : vector<2x128xf32>
    %73 = tpu.matmul %72, %27, %cst_43 {dimension_numbers = #tpu.dot_dimension_numbers<[1], [0], [0], [1], [0, 0, 1, 1], [], []>} : vector<2x64xf32>, vector<64x128xf32>, vector<2x128xf32> -> vector<2x128xf32>
    %74 = arith.addf %73, %24 : vector<2x128xf32>
    %75 = arith.negf %74 : vector<2x128xf32>
    %76 = math.exp %75 : vector<2x128xf32>
    %cst_44 = arith.constant 1.000000e+00 : f32
    %77 = vector.broadcast %cst_44 : f32 to vector<2x128xf32>
    %78 = arith.addf %77, %76 : vector<2x128xf32>
    %79 = arith.divf %77, %78 : vector<2x128xf32>
    %80 = math.tanh %74 : vector<2x128xf32>
    %81 = vector.extract_strided_slice %79 {offsets = [0, 32], sizes = [2, 32], strides = [1, 1]} : vector<2x128xf32> to vector<2x32xf32>
    %82 = arith.mulf %81, %35 : vector<2x32xf32>
    %83 = vector.extract_strided_slice %79 {offsets = [0, 0], sizes = [2, 32], strides = [1, 1]} : vector<2x128xf32> to vector<2x32xf32>
    %84 = vector.extract_strided_slice %80 {offsets = [0, 64], sizes = [2, 32], strides = [1, 1]} : vector<2x128xf32> to vector<2x32xf32>
    %85 = arith.mulf %83, %84 : vector<2x32xf32>
    %86 = arith.addf %82, %85 : vector<2x32xf32>
    %87 = vector.extract_strided_slice %79 {offsets = [0, 96], sizes = [2, 32], strides = [1, 1]} : vector<2x128xf32> to vector<2x32xf32>
    %88 = math.tanh %86 : vector<2x32xf32>
    %89 = arith.mulf %87, %88 : vector<2x32xf32>
    %cst_45 = arith.constant dense<0.000000e+00> : vector<2x32xf32>
    %90 = tpu.matmul %89, %25, %cst_45 {dimension_numbers = #tpu.dot_dimension_numbers<[1], [0], [0], [1], [0, 0, 1, 1], [], []>} : vector<2x32xf32>, vector<32x32xf32>, vector<2x32xf32> -> vector<2x32xf32>
    %91 = vector.shape_cast %90 : vector<2x32xf32> to vector<2x1x32xf32>
    %92 = vector.broadcast %91 : vector<2x1x32xf32> to vector<2x8x32xf32>
    %93 = arith.addf %8, %92 : vector<2x8x32xf32>
    %94 = math.tanh %93 : vector<2x8x32xf32>
    %95 = arith.mulf %94, %21 : vector<2x8x32xf32>
    %cst_46 = arith.constant dense<0.000000e+00> : vector<2x8xf32>
    %96 = vector.multi_reduction <add>, %95, %cst_46 [2] : vector<2x8x32xf32> to vector<2x8xf32>
    %97 = math.exp %96 : vector<2x8xf32>
    %cst_47 = arith.constant dense<0.000000e+00> : vector<2xf32>
    %98 = vector.multi_reduction <add>, %97, %cst_47 [1] : vector<2x8xf32> to vector<2xf32>
    %99 = vector.shape_cast %98 : vector<2xf32> to vector<2x1xf32>
    %100 = tpu.reciprocal %99 {approx = true} : vector<2x1xf32> -> vector<2x1xf32>
    %101 = vector.broadcast %100 : vector<2x1xf32> to vector<2x8xf32>
    %102 = arith.mulf %97, %101 : vector<2x8xf32>
    %103 = vector.shape_cast %102 : vector<2x8xf32> to vector<2x8x1xf32>
    %104 = vector.broadcast %103 : vector<2x8x1xf32> to vector<2x8x128xf32>
    %105 = arith.mulf %104, %11 : vector<2x8x128xf32>
    %cst_48 = arith.constant dense<0.000000e+00> : vector<2x128xf32>
    %106 = vector.multi_reduction <add>, %105, %cst_48 [1] : vector<2x8x128xf32> to vector<2x128xf32>
    %107 = vector.extract_strided_slice %17 {offsets = [2, 0], sizes = [2, 128], strides = [1, 1]} : vector<14x128xf32> to vector<2x128xf32>
    %108 = arith.addf %107, %106 : vector<2x128xf32>
    %cst_49 = arith.constant dense<0.000000e+00> : vector<2x128xf32>
    %109 = tpu.matmul %71, %26, %cst_49 {dimension_numbers = #tpu.dot_dimension_numbers<[1], [0], [0], [1], [0, 0, 1, 1], [], []>} : vector<2x32xf32>, vector<32x128xf32>, vector<2x128xf32> -> vector<2x128xf32>
    %110 = arith.addf %108, %109 : vector<2x128xf32>
    %111 = arith.negf %110 : vector<2x128xf32>
    %112 = math.exp %111 : vector<2x128xf32>
    %cst_50 = arith.constant 1.000000e+00 : f32
    %113 = vector.broadcast %cst_50 : f32 to vector<2x128xf32>
    %114 = arith.addf %113, %112 : vector<2x128xf32>
    %115 = arith.divf %113, %114 : vector<2x128xf32>
    %116 = math.tanh %110 : vector<2x128xf32>
    %117 = vector.extract_strided_slice %115 {offsets = [0, 32], sizes = [2, 32], strides = [1, 1]} : vector<2x128xf32> to vector<2x32xf32>
    %118 = arith.mulf %117, %68 : vector<2x32xf32>
    %119 = vector.extract_strided_slice %115 {offsets = [0, 0], sizes = [2, 32], strides = [1, 1]} : vector<2x128xf32> to vector<2x32xf32>
    %120 = vector.extract_strided_slice %116 {offsets = [0, 64], sizes = [2, 32], strides = [1, 1]} : vector<2x128xf32> to vector<2x32xf32>
    %121 = arith.mulf %119, %120 : vector<2x32xf32>
    %122 = arith.addf %118, %121 : vector<2x32xf32>
    %123 = vector.extract_strided_slice %115 {offsets = [0, 96], sizes = [2, 32], strides = [1, 1]} : vector<2x128xf32> to vector<2x32xf32>
    %124 = math.tanh %122 : vector<2x32xf32>
    %125 = arith.mulf %123, %124 : vector<2x32xf32>
    %126 = tpu.concatenate %125, %89 in 1 : vector<2x32xf32>, vector<2x32xf32> -> vector<2x64xf32>
    %cst_51 = arith.constant dense<0.000000e+00> : vector<2x128xf32>
    %127 = tpu.matmul %126, %27, %cst_51 {dimension_numbers = #tpu.dot_dimension_numbers<[1], [0], [0], [1], [0, 0, 1, 1], [], []>} : vector<2x64xf32>, vector<64x128xf32>, vector<2x128xf32> -> vector<2x128xf32>
    %128 = arith.addf %127, %24 : vector<2x128xf32>
    %129 = arith.negf %128 : vector<2x128xf32>
    %130 = math.exp %129 : vector<2x128xf32>
    %cst_52 = arith.constant 1.000000e+00 : f32
    %131 = vector.broadcast %cst_52 : f32 to vector<2x128xf32>
    %132 = arith.addf %131, %130 : vector<2x128xf32>
    %133 = arith.divf %131, %132 : vector<2x128xf32>
    %134 = math.tanh %128 : vector<2x128xf32>
    %135 = vector.extract_strided_slice %133 {offsets = [0, 32], sizes = [2, 32], strides = [1, 1]} : vector<2x128xf32> to vector<2x32xf32>
    %136 = arith.mulf %135, %86 : vector<2x32xf32>
    %137 = vector.extract_strided_slice %133 {offsets = [0, 0], sizes = [2, 32], strides = [1, 1]} : vector<2x128xf32> to vector<2x32xf32>
    %138 = vector.extract_strided_slice %134 {offsets = [0, 64], sizes = [2, 32], strides = [1, 1]} : vector<2x128xf32> to vector<2x32xf32>
    %139 = arith.mulf %137, %138 : vector<2x32xf32>
    %140 = arith.addf %136, %139 : vector<2x32xf32>
    %141 = vector.extract_strided_slice %133 {offsets = [0, 96], sizes = [2, 32], strides = [1, 1]} : vector<2x128xf32> to vector<2x32xf32>
    %142 = math.tanh %140 : vector<2x32xf32>
    %143 = arith.mulf %141, %142 : vector<2x32xf32>
    %cst_53 = arith.constant dense<0.000000e+00> : vector<2x32xf32>
    %144 = tpu.matmul %143, %25, %cst_53 {dimension_numbers = #tpu.dot_dimension_numbers<[1], [0], [0], [1], [0, 0, 1, 1], [], []>} : vector<2x32xf32>, vector<32x32xf32>, vector<2x32xf32> -> vector<2x32xf32>
    %145 = vector.shape_cast %144 : vector<2x32xf32> to vector<2x1x32xf32>
    %146 = vector.broadcast %145 : vector<2x1x32xf32> to vector<2x8x32xf32>
    %147 = arith.addf %8, %146 : vector<2x8x32xf32>
    %148 = math.tanh %147 : vector<2x8x32xf32>
    %149 = arith.mulf %148, %21 : vector<2x8x32xf32>
    %cst_54 = arith.constant dense<0.000000e+00> : vector<2x8xf32>
    %150 = vector.multi_reduction <add>, %149, %cst_54 [2] : vector<2x8x32xf32> to vector<2x8xf32>
    %151 = math.exp %150 : vector<2x8xf32>
    %cst_55 = arith.constant dense<0.000000e+00> : vector<2xf32>
    %152 = vector.multi_reduction <add>, %151, %cst_55 [1] : vector<2x8xf32> to vector<2xf32>
    %153 = vector.shape_cast %152 : vector<2xf32> to vector<2x1xf32>
    %154 = tpu.reciprocal %153 {approx = true} : vector<2x1xf32> -> vector<2x1xf32>
    %155 = vector.broadcast %154 : vector<2x1xf32> to vector<2x8xf32>
    %156 = arith.mulf %151, %155 : vector<2x8xf32>
    %157 = vector.shape_cast %156 : vector<2x8xf32> to vector<2x8x1xf32>
    %158 = vector.broadcast %157 : vector<2x8x1xf32> to vector<2x8x128xf32>
    %159 = arith.mulf %158, %11 : vector<2x8x128xf32>
    %cst_56 = arith.constant dense<0.000000e+00> : vector<2x128xf32>
    %160 = vector.multi_reduction <add>, %159, %cst_56 [1] : vector<2x8x128xf32> to vector<2x128xf32>
    %161 = vector.extract_strided_slice %17 {offsets = [4, 0], sizes = [2, 128], strides = [1, 1]} : vector<14x128xf32> to vector<2x128xf32>
    %162 = arith.addf %161, %160 : vector<2x128xf32>
    %cst_57 = arith.constant dense<0.000000e+00> : vector<2x128xf32>
    %163 = tpu.matmul %125, %26, %cst_57 {dimension_numbers = #tpu.dot_dimension_numbers<[1], [0], [0], [1], [0, 0, 1, 1], [], []>} : vector<2x32xf32>, vector<32x128xf32>, vector<2x128xf32> -> vector<2x128xf32>
    %164 = arith.addf %162, %163 : vector<2x128xf32>
    %165 = arith.negf %164 : vector<2x128xf32>
    %166 = math.exp %165 : vector<2x128xf32>
    %cst_58 = arith.constant 1.000000e+00 : f32
    %167 = vector.broadcast %cst_58 : f32 to vector<2x128xf32>
    %168 = arith.addf %167, %166 : vector<2x128xf32>
    %169 = arith.divf %167, %168 : vector<2x128xf32>
    %170 = math.tanh %164 : vector<2x128xf32>
    %171 = vector.extract_strided_slice %169 {offsets = [0, 32], sizes = [2, 32], strides = [1, 1]} : vector<2x128xf32> to vector<2x32xf32>
    %172 = arith.mulf %171, %122 : vector<2x32xf32>
    %173 = vector.extract_strided_slice %169 {offsets = [0, 0], sizes = [2, 32], strides = [1, 1]} : vector<2x128xf32> to vector<2x32xf32>
    %174 = vector.extract_strided_slice %170 {offsets = [0, 64], sizes = [2, 32], strides = [1, 1]} : vector<2x128xf32> to vector<2x32xf32>
    %175 = arith.mulf %173, %174 : vector<2x32xf32>
    %176 = arith.addf %172, %175 : vector<2x32xf32>
    %177 = vector.extract_strided_slice %169 {offsets = [0, 96], sizes = [2, 32], strides = [1, 1]} : vector<2x128xf32> to vector<2x32xf32>
    %178 = math.tanh %176 : vector<2x32xf32>
    %179 = arith.mulf %177, %178 : vector<2x32xf32>
    %180 = tpu.concatenate %179, %143 in 1 : vector<2x32xf32>, vector<2x32xf32> -> vector<2x64xf32>
    %cst_59 = arith.constant dense<0.000000e+00> : vector<2x128xf32>
    %181 = tpu.matmul %180, %27, %cst_59 {dimension_numbers = #tpu.dot_dimension_numbers<[1], [0], [0], [1], [0, 0, 1, 1], [], []>} : vector<2x64xf32>, vector<64x128xf32>, vector<2x128xf32> -> vector<2x128xf32>
    %182 = arith.addf %181, %24 : vector<2x128xf32>
    %183 = arith.negf %182 : vector<2x128xf32>
    %184 = math.exp %183 : vector<2x128xf32>
    %cst_60 = arith.constant 1.000000e+00 : f32
    %185 = vector.broadcast %cst_60 : f32 to vector<2x128xf32>
    %186 = arith.addf %185, %184 : vector<2x128xf32>
    %187 = arith.divf %185, %186 : vector<2x128xf32>
    %188 = math.tanh %182 : vector<2x128xf32>
    %189 = vector.extract_strided_slice %187 {offsets = [0, 32], sizes = [2, 32], strides = [1, 1]} : vector<2x128xf32> to vector<2x32xf32>
    %190 = arith.mulf %189, %140 : vector<2x32xf32>
    %191 = vector.extract_strided_slice %187 {offsets = [0, 0], sizes = [2, 32], strides = [1, 1]} : vector<2x128xf32> to vector<2x32xf32>
    %192 = vector.extract_strided_slice %188 {offsets = [0, 64], sizes = [2, 32], strides = [1, 1]} : vector<2x128xf32> to vector<2x32xf32>
    %193 = arith.mulf %191, %192 : vector<2x32xf32>
    %194 = arith.addf %190, %193 : vector<2x32xf32>
    %195 = vector.extract_strided_slice %187 {offsets = [0, 96], sizes = [2, 32], strides = [1, 1]} : vector<2x128xf32> to vector<2x32xf32>
    %196 = math.tanh %194 : vector<2x32xf32>
    %197 = arith.mulf %195, %196 : vector<2x32xf32>
    %cst_61 = arith.constant dense<0.000000e+00> : vector<2x32xf32>
    %198 = tpu.matmul %197, %25, %cst_61 {dimension_numbers = #tpu.dot_dimension_numbers<[1], [0], [0], [1], [0, 0, 1, 1], [], []>} : vector<2x32xf32>, vector<32x32xf32>, vector<2x32xf32> -> vector<2x32xf32>
    %199 = vector.shape_cast %198 : vector<2x32xf32> to vector<2x1x32xf32>
    %200 = vector.broadcast %199 : vector<2x1x32xf32> to vector<2x8x32xf32>
    %201 = arith.addf %8, %200 : vector<2x8x32xf32>
    %202 = math.tanh %201 : vector<2x8x32xf32>
    %203 = arith.mulf %202, %21 : vector<2x8x32xf32>
    %cst_62 = arith.constant dense<0.000000e+00> : vector<2x8xf32>
    %204 = vector.multi_reduction <add>, %203, %cst_62 [2] : vector<2x8x32xf32> to vector<2x8xf32>
    %205 = math.exp %204 : vector<2x8xf32>
    %cst_63 = arith.constant dense<0.000000e+00> : vector<2xf32>
    %206 = vector.multi_reduction <add>, %205, %cst_63 [1] : vector<2x8xf32> to vector<2xf32>
    %207 = vector.shape_cast %206 : vector<2xf32> to vector<2x1xf32>
    %208 = tpu.reciprocal %207 {approx = true} : vector<2x1xf32> -> vector<2x1xf32>
    %209 = vector.broadcast %208 : vector<2x1xf32> to vector<2x8xf32>
    %210 = arith.mulf %205, %209 : vector<2x8xf32>
    %211 = vector.shape_cast %210 : vector<2x8xf32> to vector<2x8x1xf32>
    %212 = vector.broadcast %211 : vector<2x8x1xf32> to vector<2x8x128xf32>
    %213 = arith.mulf %212, %11 : vector<2x8x128xf32>
    %cst_64 = arith.constant dense<0.000000e+00> : vector<2x128xf32>
    %214 = vector.multi_reduction <add>, %213, %cst_64 [1] : vector<2x8x128xf32> to vector<2x128xf32>
    %215 = vector.extract_strided_slice %17 {offsets = [6, 0], sizes = [2, 128], strides = [1, 1]} : vector<14x128xf32> to vector<2x128xf32>
    %216 = arith.addf %215, %214 : vector<2x128xf32>
    %cst_65 = arith.constant dense<0.000000e+00> : vector<2x128xf32>
    %217 = tpu.matmul %179, %26, %cst_65 {dimension_numbers = #tpu.dot_dimension_numbers<[1], [0], [0], [1], [0, 0, 1, 1], [], []>} : vector<2x32xf32>, vector<32x128xf32>, vector<2x128xf32> -> vector<2x128xf32>
    %218 = arith.addf %216, %217 : vector<2x128xf32>
    %219 = arith.negf %218 : vector<2x128xf32>
    %220 = math.exp %219 : vector<2x128xf32>
    %cst_66 = arith.constant 1.000000e+00 : f32
    %221 = vector.broadcast %cst_66 : f32 to vector<2x128xf32>
    %222 = arith.addf %221, %220 : vector<2x128xf32>
    %223 = arith.divf %221, %222 : vector<2x128xf32>
    %224 = math.tanh %218 : vector<2x128xf32>
    %225 = vector.extract_strided_slice %223 {offsets = [0, 32], sizes = [2, 32], strides = [1, 1]} : vector<2x128xf32> to vector<2x32xf32>
    %226 = arith.mulf %225, %176 : vector<2x32xf32>
    %227 = vector.extract_strided_slice %223 {offsets = [0, 0], sizes = [2, 32], strides = [1, 1]} : vector<2x128xf32> to vector<2x32xf32>
    %228 = vector.extract_strided_slice %224 {offsets = [0, 64], sizes = [2, 32], strides = [1, 1]} : vector<2x128xf32> to vector<2x32xf32>
    %229 = arith.mulf %227, %228 : vector<2x32xf32>
    %230 = arith.addf %226, %229 : vector<2x32xf32>
    %231 = vector.extract_strided_slice %223 {offsets = [0, 96], sizes = [2, 32], strides = [1, 1]} : vector<2x128xf32> to vector<2x32xf32>
    %232 = math.tanh %230 : vector<2x32xf32>
    %233 = arith.mulf %231, %232 : vector<2x32xf32>
    %234 = tpu.concatenate %233, %197 in 1 : vector<2x32xf32>, vector<2x32xf32> -> vector<2x64xf32>
    %cst_67 = arith.constant dense<0.000000e+00> : vector<2x128xf32>
    %235 = tpu.matmul %234, %27, %cst_67 {dimension_numbers = #tpu.dot_dimension_numbers<[1], [0], [0], [1], [0, 0, 1, 1], [], []>} : vector<2x64xf32>, vector<64x128xf32>, vector<2x128xf32> -> vector<2x128xf32>
    %236 = arith.addf %235, %24 : vector<2x128xf32>
    %237 = arith.negf %236 : vector<2x128xf32>
    %238 = math.exp %237 : vector<2x128xf32>
    %cst_68 = arith.constant 1.000000e+00 : f32
    %239 = vector.broadcast %cst_68 : f32 to vector<2x128xf32>
    %240 = arith.addf %239, %238 : vector<2x128xf32>
    %241 = arith.divf %239, %240 : vector<2x128xf32>
    %242 = math.tanh %236 : vector<2x128xf32>
    %243 = vector.extract_strided_slice %241 {offsets = [0, 32], sizes = [2, 32], strides = [1, 1]} : vector<2x128xf32> to vector<2x32xf32>
    %244 = arith.mulf %243, %194 : vector<2x32xf32>
    %245 = vector.extract_strided_slice %241 {offsets = [0, 0], sizes = [2, 32], strides = [1, 1]} : vector<2x128xf32> to vector<2x32xf32>
    %246 = vector.extract_strided_slice %242 {offsets = [0, 64], sizes = [2, 32], strides = [1, 1]} : vector<2x128xf32> to vector<2x32xf32>
    %247 = arith.mulf %245, %246 : vector<2x32xf32>
    %248 = arith.addf %244, %247 : vector<2x32xf32>
    %249 = vector.extract_strided_slice %241 {offsets = [0, 96], sizes = [2, 32], strides = [1, 1]} : vector<2x128xf32> to vector<2x32xf32>
    %250 = math.tanh %248 : vector<2x32xf32>
    %251 = arith.mulf %249, %250 : vector<2x32xf32>
    %cst_69 = arith.constant dense<0.000000e+00> : vector<2x32xf32>
    %252 = tpu.matmul %251, %25, %cst_69 {dimension_numbers = #tpu.dot_dimension_numbers<[1], [0], [0], [1], [0, 0, 1, 1], [], []>} : vector<2x32xf32>, vector<32x32xf32>, vector<2x32xf32> -> vector<2x32xf32>
    %253 = vector.shape_cast %252 : vector<2x32xf32> to vector<2x1x32xf32>
    %254 = vector.broadcast %253 : vector<2x1x32xf32> to vector<2x8x32xf32>
    %255 = arith.addf %8, %254 : vector<2x8x32xf32>
    %256 = math.tanh %255 : vector<2x8x32xf32>
    %257 = arith.mulf %256, %21 : vector<2x8x32xf32>
    %cst_70 = arith.constant dense<0.000000e+00> : vector<2x8xf32>
    %258 = vector.multi_reduction <add>, %257, %cst_70 [2] : vector<2x8x32xf32> to vector<2x8xf32>
    %259 = math.exp %258 : vector<2x8xf32>
    %cst_71 = arith.constant dense<0.000000e+00> : vector<2xf32>
    %260 = vector.multi_reduction <add>, %259, %cst_71 [1] : vector<2x8xf32> to vector<2xf32>
    %261 = vector.shape_cast %260 : vector<2xf32> to vector<2x1xf32>
    %262 = tpu.reciprocal %261 {approx = true} : vector<2x1xf32> -> vector<2x1xf32>
    %263 = vector.broadcast %262 : vector<2x1xf32> to vector<2x8xf32>
    %264 = arith.mulf %259, %263 : vector<2x8xf32>
    %265 = vector.shape_cast %264 : vector<2x8xf32> to vector<2x8x1xf32>
    %266 = vector.broadcast %265 : vector<2x8x1xf32> to vector<2x8x128xf32>
    %267 = arith.mulf %266, %11 : vector<2x8x128xf32>
    %cst_72 = arith.constant dense<0.000000e+00> : vector<2x128xf32>
    %268 = vector.multi_reduction <add>, %267, %cst_72 [1] : vector<2x8x128xf32> to vector<2x128xf32>
    %269 = vector.extract_strided_slice %17 {offsets = [8, 0], sizes = [2, 128], strides = [1, 1]} : vector<14x128xf32> to vector<2x128xf32>
    %270 = arith.addf %269, %268 : vector<2x128xf32>
    %cst_73 = arith.constant dense<0.000000e+00> : vector<2x128xf32>
    %271 = tpu.matmul %233, %26, %cst_73 {dimension_numbers = #tpu.dot_dimension_numbers<[1], [0], [0], [1], [0, 0, 1, 1], [], []>} : vector<2x32xf32>, vector<32x128xf32>, vector<2x128xf32> -> vector<2x128xf32>
    %272 = arith.addf %270, %271 : vector<2x128xf32>
    %273 = arith.negf %272 : vector<2x128xf32>
    %274 = math.exp %273 : vector<2x128xf32>
    %cst_74 = arith.constant 1.000000e+00 : f32
    %275 = vector.broadcast %cst_74 : f32 to vector<2x128xf32>
    %276 = arith.addf %275, %274 : vector<2x128xf32>
    %277 = arith.divf %275, %276 : vector<2x128xf32>
    %278 = math.tanh %272 : vector<2x128xf32>
    %279 = vector.extract_strided_slice %277 {offsets = [0, 32], sizes = [2, 32], strides = [1, 1]} : vector<2x128xf32> to vector<2x32xf32>
    %280 = arith.mulf %279, %230 : vector<2x32xf32>
    %281 = vector.extract_strided_slice %277 {offsets = [0, 0], sizes = [2, 32], strides = [1, 1]} : vector<2x128xf32> to vector<2x32xf32>
    %282 = vector.extract_strided_slice %278 {offsets = [0, 64], sizes = [2, 32], strides = [1, 1]} : vector<2x128xf32> to vector<2x32xf32>
    %283 = arith.mulf %281, %282 : vector<2x32xf32>
    %284 = arith.addf %280, %283 : vector<2x32xf32>
    %285 = vector.extract_strided_slice %277 {offsets = [0, 96], sizes = [2, 32], strides = [1, 1]} : vector<2x128xf32> to vector<2x32xf32>
    %286 = math.tanh %284 : vector<2x32xf32>
    %287 = arith.mulf %285, %286 : vector<2x32xf32>
    %288 = tpu.concatenate %287, %251 in 1 : vector<2x32xf32>, vector<2x32xf32> -> vector<2x64xf32>
    %cst_75 = arith.constant dense<0.000000e+00> : vector<2x128xf32>
    %289 = tpu.matmul %288, %27, %cst_75 {dimension_numbers = #tpu.dot_dimension_numbers<[1], [0], [0], [1], [0, 0, 1, 1], [], []>} : vector<2x64xf32>, vector<64x128xf32>, vector<2x128xf32> -> vector<2x128xf32>
    %290 = arith.addf %289, %24 : vector<2x128xf32>
    %291 = arith.negf %290 : vector<2x128xf32>
    %292 = math.exp %291 : vector<2x128xf32>
    %cst_76 = arith.constant 1.000000e+00 : f32
    %293 = vector.broadcast %cst_76 : f32 to vector<2x128xf32>
    %294 = arith.addf %293, %292 : vector<2x128xf32>
    %295 = arith.divf %293, %294 : vector<2x128xf32>
    %296 = math.tanh %290 : vector<2x128xf32>
    %297 = vector.extract_strided_slice %295 {offsets = [0, 32], sizes = [2, 32], strides = [1, 1]} : vector<2x128xf32> to vector<2x32xf32>
    %298 = arith.mulf %297, %248 : vector<2x32xf32>
    %299 = vector.extract_strided_slice %295 {offsets = [0, 0], sizes = [2, 32], strides = [1, 1]} : vector<2x128xf32> to vector<2x32xf32>
    %300 = vector.extract_strided_slice %296 {offsets = [0, 64], sizes = [2, 32], strides = [1, 1]} : vector<2x128xf32> to vector<2x32xf32>
    %301 = arith.mulf %299, %300 : vector<2x32xf32>
    %302 = arith.addf %298, %301 : vector<2x32xf32>
    %303 = vector.extract_strided_slice %295 {offsets = [0, 96], sizes = [2, 32], strides = [1, 1]} : vector<2x128xf32> to vector<2x32xf32>
    %304 = math.tanh %302 : vector<2x32xf32>
    %305 = arith.mulf %303, %304 : vector<2x32xf32>
    %cst_77 = arith.constant dense<0.000000e+00> : vector<2x32xf32>
    %306 = tpu.matmul %305, %25, %cst_77 {dimension_numbers = #tpu.dot_dimension_numbers<[1], [0], [0], [1], [0, 0, 1, 1], [], []>} : vector<2x32xf32>, vector<32x32xf32>, vector<2x32xf32> -> vector<2x32xf32>
    %307 = vector.shape_cast %306 : vector<2x32xf32> to vector<2x1x32xf32>
    %308 = vector.broadcast %307 : vector<2x1x32xf32> to vector<2x8x32xf32>
    %309 = arith.addf %8, %308 : vector<2x8x32xf32>
    %310 = math.tanh %309 : vector<2x8x32xf32>
    %311 = arith.mulf %310, %21 : vector<2x8x32xf32>
    %cst_78 = arith.constant dense<0.000000e+00> : vector<2x8xf32>
    %312 = vector.multi_reduction <add>, %311, %cst_78 [2] : vector<2x8x32xf32> to vector<2x8xf32>
    %313 = math.exp %312 : vector<2x8xf32>
    %cst_79 = arith.constant dense<0.000000e+00> : vector<2xf32>
    %314 = vector.multi_reduction <add>, %313, %cst_79 [1] : vector<2x8xf32> to vector<2xf32>
    %315 = vector.shape_cast %314 : vector<2xf32> to vector<2x1xf32>
    %316 = tpu.reciprocal %315 {approx = true} : vector<2x1xf32> -> vector<2x1xf32>
    %317 = vector.broadcast %316 : vector<2x1xf32> to vector<2x8xf32>
    %318 = arith.mulf %313, %317 : vector<2x8xf32>
    %319 = vector.shape_cast %318 : vector<2x8xf32> to vector<2x8x1xf32>
    %320 = vector.broadcast %319 : vector<2x8x1xf32> to vector<2x8x128xf32>
    %321 = arith.mulf %320, %11 : vector<2x8x128xf32>
    %cst_80 = arith.constant dense<0.000000e+00> : vector<2x128xf32>
    %322 = vector.multi_reduction <add>, %321, %cst_80 [1] : vector<2x8x128xf32> to vector<2x128xf32>
    %323 = vector.extract_strided_slice %17 {offsets = [10, 0], sizes = [2, 128], strides = [1, 1]} : vector<14x128xf32> to vector<2x128xf32>
    %324 = arith.addf %323, %322 : vector<2x128xf32>
    %cst_81 = arith.constant dense<0.000000e+00> : vector<2x128xf32>
    %325 = tpu.matmul %287, %26, %cst_81 {dimension_numbers = #tpu.dot_dimension_numbers<[1], [0], [0], [1], [0, 0, 1, 1], [], []>} : vector<2x32xf32>, vector<32x128xf32>, vector<2x128xf32> -> vector<2x128xf32>
    %326 = arith.addf %324, %325 : vector<2x128xf32>
    %327 = arith.negf %326 : vector<2x128xf32>
    %328 = math.exp %327 : vector<2x128xf32>
    %cst_82 = arith.constant 1.000000e+00 : f32
    %329 = vector.broadcast %cst_82 : f32 to vector<2x128xf32>
    %330 = arith.addf %329, %328 : vector<2x128xf32>
    %331 = arith.divf %329, %330 : vector<2x128xf32>
    %332 = math.tanh %326 : vector<2x128xf32>
    %333 = vector.extract_strided_slice %331 {offsets = [0, 32], sizes = [2, 32], strides = [1, 1]} : vector<2x128xf32> to vector<2x32xf32>
    %334 = arith.mulf %333, %284 : vector<2x32xf32>
    %335 = vector.extract_strided_slice %331 {offsets = [0, 0], sizes = [2, 32], strides = [1, 1]} : vector<2x128xf32> to vector<2x32xf32>
    %336 = vector.extract_strided_slice %332 {offsets = [0, 64], sizes = [2, 32], strides = [1, 1]} : vector<2x128xf32> to vector<2x32xf32>
    %337 = arith.mulf %335, %336 : vector<2x32xf32>
    %338 = arith.addf %334, %337 : vector<2x32xf32>
    %339 = vector.extract_strided_slice %331 {offsets = [0, 96], sizes = [2, 32], strides = [1, 1]} : vector<2x128xf32> to vector<2x32xf32>
    %340 = math.tanh %338 : vector<2x32xf32>
    %341 = arith.mulf %339, %340 : vector<2x32xf32>
    %342 = tpu.concatenate %341, %305 in 1 : vector<2x32xf32>, vector<2x32xf32> -> vector<2x64xf32>
    %cst_83 = arith.constant dense<0.000000e+00> : vector<2x128xf32>
    %343 = tpu.matmul %342, %27, %cst_83 {dimension_numbers = #tpu.dot_dimension_numbers<[1], [0], [0], [1], [0, 0, 1, 1], [], []>} : vector<2x64xf32>, vector<64x128xf32>, vector<2x128xf32> -> vector<2x128xf32>
    %344 = arith.addf %343, %24 : vector<2x128xf32>
    %345 = arith.negf %344 : vector<2x128xf32>
    %346 = math.exp %345 : vector<2x128xf32>
    %cst_84 = arith.constant 1.000000e+00 : f32
    %347 = vector.broadcast %cst_84 : f32 to vector<2x128xf32>
    %348 = arith.addf %347, %346 : vector<2x128xf32>
    %349 = arith.divf %347, %348 : vector<2x128xf32>
    %350 = math.tanh %344 : vector<2x128xf32>
    %351 = vector.extract_strided_slice %349 {offsets = [0, 32], sizes = [2, 32], strides = [1, 1]} : vector<2x128xf32> to vector<2x32xf32>
    %352 = arith.mulf %351, %302 : vector<2x32xf32>
    %353 = vector.extract_strided_slice %349 {offsets = [0, 0], sizes = [2, 32], strides = [1, 1]} : vector<2x128xf32> to vector<2x32xf32>
    %354 = vector.extract_strided_slice %350 {offsets = [0, 64], sizes = [2, 32], strides = [1, 1]} : vector<2x128xf32> to vector<2x32xf32>
    %355 = arith.mulf %353, %354 : vector<2x32xf32>
    %356 = arith.addf %352, %355 : vector<2x32xf32>
    %357 = vector.extract_strided_slice %349 {offsets = [0, 96], sizes = [2, 32], strides = [1, 1]} : vector<2x128xf32> to vector<2x32xf32>
    %358 = math.tanh %356 : vector<2x32xf32>
    %359 = arith.mulf %357, %358 : vector<2x32xf32>
    %cst_85 = arith.constant dense<0.000000e+00> : vector<2x32xf32>
    %360 = tpu.matmul %359, %25, %cst_85 {dimension_numbers = #tpu.dot_dimension_numbers<[1], [0], [0], [1], [0, 0, 1, 1], [], []>} : vector<2x32xf32>, vector<32x32xf32>, vector<2x32xf32> -> vector<2x32xf32>
    %361 = vector.shape_cast %360 : vector<2x32xf32> to vector<2x1x32xf32>
    %362 = vector.broadcast %361 : vector<2x1x32xf32> to vector<2x8x32xf32>
    %363 = arith.addf %8, %362 : vector<2x8x32xf32>
    %364 = math.tanh %363 : vector<2x8x32xf32>
    %365 = arith.mulf %364, %21 : vector<2x8x32xf32>
    %cst_86 = arith.constant dense<0.000000e+00> : vector<2x8xf32>
    %366 = vector.multi_reduction <add>, %365, %cst_86 [2] : vector<2x8x32xf32> to vector<2x8xf32>
    %367 = math.exp %366 : vector<2x8xf32>
    %cst_87 = arith.constant dense<0.000000e+00> : vector<2xf32>
    %368 = vector.multi_reduction <add>, %367, %cst_87 [1] : vector<2x8xf32> to vector<2xf32>
    %369 = vector.shape_cast %368 : vector<2xf32> to vector<2x1xf32>
    %370 = tpu.reciprocal %369 {approx = true} : vector<2x1xf32> -> vector<2x1xf32>
    %371 = vector.broadcast %370 : vector<2x1xf32> to vector<2x8xf32>
    %372 = arith.mulf %367, %371 : vector<2x8xf32>
    %373 = vector.shape_cast %372 : vector<2x8xf32> to vector<2x8x1xf32>
    %374 = vector.broadcast %373 : vector<2x8x1xf32> to vector<2x8x128xf32>
    %375 = arith.mulf %374, %11 : vector<2x8x128xf32>
    %cst_88 = arith.constant dense<0.000000e+00> : vector<2x128xf32>
    %376 = vector.multi_reduction <add>, %375, %cst_88 [1] : vector<2x8x128xf32> to vector<2x128xf32>
    %377 = vector.extract_strided_slice %17 {offsets = [12, 0], sizes = [2, 128], strides = [1, 1]} : vector<14x128xf32> to vector<2x128xf32>
    %378 = arith.addf %377, %376 : vector<2x128xf32>
    %cst_89 = arith.constant dense<0.000000e+00> : vector<2x128xf32>
    %379 = tpu.matmul %341, %26, %cst_89 {dimension_numbers = #tpu.dot_dimension_numbers<[1], [0], [0], [1], [0, 0, 1, 1], [], []>} : vector<2x32xf32>, vector<32x128xf32>, vector<2x128xf32> -> vector<2x128xf32>
    %380 = arith.addf %378, %379 : vector<2x128xf32>
    %381 = arith.negf %380 : vector<2x128xf32>
    %382 = math.exp %381 : vector<2x128xf32>
    %cst_90 = arith.constant 1.000000e+00 : f32
    %383 = vector.broadcast %cst_90 : f32 to vector<2x128xf32>
    %384 = arith.addf %383, %382 : vector<2x128xf32>
    %385 = arith.divf %383, %384 : vector<2x128xf32>
    %386 = math.tanh %380 : vector<2x128xf32>
    %387 = vector.extract_strided_slice %385 {offsets = [0, 32], sizes = [2, 32], strides = [1, 1]} : vector<2x128xf32> to vector<2x32xf32>
    %388 = arith.mulf %387, %338 : vector<2x32xf32>
    %389 = vector.extract_strided_slice %385 {offsets = [0, 0], sizes = [2, 32], strides = [1, 1]} : vector<2x128xf32> to vector<2x32xf32>
    %390 = vector.extract_strided_slice %386 {offsets = [0, 64], sizes = [2, 32], strides = [1, 1]} : vector<2x128xf32> to vector<2x32xf32>
    %391 = arith.mulf %389, %390 : vector<2x32xf32>
    %392 = arith.addf %388, %391 : vector<2x32xf32>
    %393 = vector.extract_strided_slice %385 {offsets = [0, 96], sizes = [2, 32], strides = [1, 1]} : vector<2x128xf32> to vector<2x32xf32>
    %394 = math.tanh %392 : vector<2x32xf32>
    %395 = arith.mulf %393, %394 : vector<2x32xf32>
    %396 = tpu.concatenate %395, %359 in 1 : vector<2x32xf32>, vector<2x32xf32> -> vector<2x64xf32>
    %cst_91 = arith.constant dense<0.000000e+00> : vector<2x128xf32>
    %397 = tpu.matmul %396, %27, %cst_91 {dimension_numbers = #tpu.dot_dimension_numbers<[1], [0], [0], [1], [0, 0, 1, 1], [], []>} : vector<2x64xf32>, vector<64x128xf32>, vector<2x128xf32> -> vector<2x128xf32>
    %398 = arith.addf %397, %24 : vector<2x128xf32>
    %399 = arith.negf %398 : vector<2x128xf32>
    %400 = math.exp %399 : vector<2x128xf32>
    %cst_92 = arith.constant 1.000000e+00 : f32
    %401 = vector.broadcast %cst_92 : f32 to vector<2x128xf32>
    %402 = arith.addf %401, %400 : vector<2x128xf32>
    %403 = arith.divf %401, %402 : vector<2x128xf32>
    %404 = math.tanh %398 : vector<2x128xf32>
    %405 = vector.extract_strided_slice %403 {offsets = [0, 32], sizes = [2, 32], strides = [1, 1]} : vector<2x128xf32> to vector<2x32xf32>
    %406 = arith.mulf %405, %356 : vector<2x32xf32>
    %407 = vector.extract_strided_slice %403 {offsets = [0, 0], sizes = [2, 32], strides = [1, 1]} : vector<2x128xf32> to vector<2x32xf32>
    %408 = vector.extract_strided_slice %404 {offsets = [0, 64], sizes = [2, 32], strides = [1, 1]} : vector<2x128xf32> to vector<2x32xf32>
    %409 = arith.mulf %407, %408 : vector<2x32xf32>
    %410 = arith.addf %406, %409 : vector<2x32xf32>
    %411 = vector.extract_strided_slice %403 {offsets = [0, 96], sizes = [2, 32], strides = [1, 1]} : vector<2x128xf32> to vector<2x32xf32>
    %412 = math.tanh %410 : vector<2x32xf32>
    %413 = arith.mulf %411, %412 : vector<2x32xf32>
    %414 = tpu.concatenate %89, %143, %197, %251, %305, %359, %413 in 0 : vector<2x32xf32>, vector<2x32xf32>, vector<2x32xf32>, vector<2x32xf32>, vector<2x32xf32>, vector<2x32xf32>, vector<2x32xf32> -> vector<14x32xf32>
    %c0_93 = arith.constant 0 : index
    %c0_94 = arith.constant 0 : index
    %415 = vector.load %arg14[%c0_93, %c0_94] : memref<32x16xf32, #tpu.memory_space<vmem>>, vector<32x16xf32>
    %cst_95 = arith.constant dense<0.000000e+00> : vector<14x16xf32>
    %416 = tpu.matmul %414, %415, %cst_95 {dimension_numbers = #tpu.dot_dimension_numbers<[1], [0], [0], [1], [0, 0, 1, 1], [], []>} : vector<14x32xf32>, vector<32x16xf32>, vector<14x16xf32> -> vector<14x16xf32>
    %c0_96 = arith.constant 0 : index
    %c0_97 = arith.constant 0 : index
    %417 = vector.load %arg15[%c0_96, %c0_97] : memref<1x16xf32, #tpu.memory_space<vmem>>, vector<1x16xf32>
    %418 = vector.broadcast %417 : vector<1x16xf32> to vector<14x16xf32>
    %419 = arith.addf %416, %418 : vector<14x16xf32>
    %c0_98 = arith.constant 0 : index
    %c0_99 = arith.constant 0 : index
    %420 = vector.load %arg16[%c0_98, %c0_99] : memref<14x16xf32, #tpu.memory_space<vmem>>, vector<14x16xf32>
    tpu.vector_store %arg16[%c0_98, %c0_99], %419 {strides = array<i32>} : memref<14x16xf32, #tpu.memory_space<vmem>>, vector<14x16xf32>,
    %c0_100 = arith.constant 0 : index
    %c0_101 = arith.constant 0 : index
    %c0_102 = arith.constant 0 : index
    %421 = vector.load %arg17[%c0_100, %c0_101, %c0_102] : memref<2x2x32xf32, #tpu.memory_space<vmem>>, vector<1x2x32xf32>
    %422 = vector.shape_cast %421 : vector<1x2x32xf32> to vector<2x32xf32>
    %423 = vector.shape_cast %395 : vector<2x32xf32> to vector<1x2x32xf32>
    tpu.vector_store %arg17[%c0_100, %c0_101, %c0_102], %423 {strides = array<i32>} : memref<2x2x32xf32, #tpu.memory_space<vmem>>, vector<1x2x32xf32>,
    %c1_103 = arith.constant 1 : index
    %c0_104 = arith.constant 0 : index
    %c0_105 = arith.constant 0 : index
    %424 = vector.load %arg17[%c1_103, %c0_104, %c0_105] : memref<2x2x32xf32, #tpu.memory_space<vmem>>, vector<1x2x32xf32>
    %425 = vector.shape_cast %424 : vector<1x2x32xf32> to vector<2x32xf32>
    %426 = vector.shape_cast %413 : vector<2x32xf32> to vector<1x2x32xf32>
    tpu.vector_store %arg17[%c1_103, %c0_104, %c0_105], %426 {strides = array<i32>} : memref<2x2x32xf32, #tpu.memory_space<vmem>>, vector<1x2x32xf32>,
    %c0_106 = arith.constant 0 : index
    %c0_107 = arith.constant 0 : index
    %c0_108 = arith.constant 0 : index
    %427 = vector.load %arg18[%c0_106, %c0_107, %c0_108] : memref<2x2x32xf32, #tpu.memory_space<vmem>>, vector<1x2x32xf32>
    %428 = vector.shape_cast %427 : vector<1x2x32xf32> to vector<2x32xf32>
    %429 = vector.shape_cast %392 : vector<2x32xf32> to vector<1x2x32xf32>
    tpu.vector_store %arg18[%c0_106, %c0_107, %c0_108], %429 {strides = array<i32>} : memref<2x2x32xf32, #tpu.memory_space<vmem>>, vector<1x2x32xf32>,
    %c1_109 = arith.constant 1 : index
    %c0_110 = arith.constant 0 : index
    %c0_111 = arith.constant 0 : index
    %430 = vector.load %arg18[%c1_109, %c0_110, %c0_111] : memref<2x2x32xf32, #tpu.memory_space<vmem>>, vector<1x2x32xf32>
    %431 = vector.shape_cast %430 : vector<1x2x32xf32> to vector<2x32xf32>
    %432 = vector.shape_cast %410 : vector<2x32xf32> to vector<1x2x32xf32>
    tpu.vector_store %arg18[%c1_109, %c0_110, %c0_111], %432 {strides = array<i32>} : memref<2x2x32xf32, #tpu.memory_space<vmem>>, vector<1x2x32xf32>,
    return
  }
}

</mosaic_0001>

<bundles_post_ra>
// kernel: decoder_forward.1
= control target key start
LH: loop header
LB: loop body
LE: loop exit
PB: predicated region body
PF: predicated region fallthrough
CT: control target
= control target key end

     0   :  { %s5137_s0 = inlined_call_operand.vmem [shape: f32[14,32], index: 0, kind: input, shape index: {}]   ;;  %s5138_s1 = inlined_call_operand.vmem [shape: f32[2,8,32], index: 1, kind: input, shape index: {}]   ;;  %s5139_s2 = inlined_call_operand.vmem [shape: f32[2,2,32], index: 2, kind: input, shape index: {}]   ;;  %s5140_s3 = inlined_call_operand.vmem [shape: f32[2,2,32], index: 3, kind: input, shape index: {}]   ;;  %s5141_s4 = inlined_call_operand.vmem [shape: f32[32,32], index: 4, kind: input, shape index: {}]   ;;  %s5142_s5 = inlined_call_operand.vmem [shape: f32[32,32], index: 5, kind: input, shape index: {}]   ;;  %s5143_s6 = inlined_call_operand.vmem [shape: f32[1,32], index: 6, kind: input, shape index: {}]   ;;  %s5144_s7 = inlined_call_operand.vmem [shape: f32[1,32], index: 7, kind: input, shape index: {}]   ;;  %s5145_s8 = inlined_call_operand.vmem [shape: f32[32,128], index: 8, kind: input, shape index: {}]   ;;  %s5146_s9 = inlined_call_operand.vmem [shape: f32[32,128], index: 9, kind: input, shape index: {}]   ;;  %s5147_s10 = inlined_call_operand.vmem [shape: f32[32,128], index: 10, kind: input, shape index: {}]   ;;  %s5148_s11 = inlined_call_operand.vmem [shape: f32[1,128], index: 11, kind: input, shape index: {}]   ;;  %s5149_s12 = inlined_call_operand.vmem [shape: f32[64,128], index: 12, kind: input, shape index: {}]   ;;  %s5150_s13 = inlined_call_operand.vmem [shape: f32[1,128], index: 13, kind: input, shape index: {}]   ;;  %s5151_s14 = inlined_call_operand.vmem [shape: f32[32,16], index: 14, kind: input, shape index: {}]   ;;  %s5152_s15 = inlined_call_operand.vmem [shape: f32[1,16], index: 15, kind: input, shape index: {}]   ;;  %s5153_s16 = inlined_call_operand.vmem [shape: f32[14,16], index: 16, kind: output, shape index: {0}]   ;;  %s5154_s17 = inlined_call_operand.hbm [shape: f32[2,2,32], index: 17, kind: output, shape index: {1}]   ;;  %s5155_s18 = inlined_call_operand.hbm [shape: f32[2,2,32], index: 18, kind: output, shape index: {2}]  }
   0x1   :  { %5159 = sst [smem:[#allocation8_spill]] %s5137_s0 }
   0x2   :  { %5160 = sst [smem:[#allocation9_spill]] %s5138_s1 }
   0x3   :  { %5161 = sst [smem:[#allocation10_spill]] %s5139_s2 }
   0x4   :  { %24 = vsyncpa [#allocation3], 0  ;;  %v158_v0 = vld [vmem:[%s5146_s9 + $0x18] sm:$0xff]  ;;  %v157_v1 = vld [vmem:[%s5146_s9 + $0x10] sm:$0xff]  ;;  %vm64_vm0 = vcmask 261120   ;;  %s5162_s1 = sld [smem:[#allocation9_spill]] }
   0x5   :  { %3514 = vmatprep.subr.mxu1 %v158_v0  ;;  %v63_v3 = vld [vmem:[%s5142_s5 + $0x18] sm:$0xff]  ;;  %v156_v4 = vld [vmem:[%s5146_s9 + $0x8] sm:$0xff]  ;;  %v62_v5 = vld [vmem:[%s5142_s5 + $0x10] sm:$0xff] }
   0x6   :  { %3515 = vmatpush3.msra.mxu1 %v158_v0  ;;  %3503 = vmatprep.subr.mxu0 %v63_v3  ;;  %v155_v6 = vld [vmem:[%s5146_s9] sm:$0xff]  ;;  %v61_v7 = vld [vmem:[%s5142_s5 + $0x8] sm:$0xff] }
   0x7   :  { %3516 = vmatprep.subr.mxu1 %v157_v1  ;;  %3504 = vmatpush3.msra.mxu0 %v63_v3 }
   0x8   :  { %3517 = vmatpush3.msra.mxu1 %v157_v1  ;;  %3505 = vmatprep.subr.mxu0 %v62_v5 }
   0x9   :  { %3518 = vmatprep.subr.mxu1 %v156_v4 }
   0xa   :  { %v58_v2 = vld [vmem:[%s5162_s1] sm:$0xff] }
   0xb   :  { %3522 = vmatprep.mubr.msk.f32.mxu1 %vm64_vm0, %v58_v2 }
   0xc   :  { %25 = vsyncpa [#allocation5], 0  ;;  %3519 = vmatpush3.msra.mxu1 %v156_v4  ;;  %v59_v8 = vld [vmem:[%s5162_s1 + $0x8] sm:$0xff]  ;;  %3506 = vmatpush3.msra.mxu0 %v62_v5  ;;  %v4226_v9 = vld [vmem:[%s5141_s4 + $0x18] sm:$0xff]  ;;  %v4090_v11 = vmov 0.0   ;;  %vm4091_vm1 = vmmov 0   ;;  %v441_v18 = vlaneseq }
   0xd   :  { %3520 = vmatprep.subr.mxu1 %v155_v6  ;;  %3507 = vmatprep.subr.mxu0 %v61_v7  ;;  %v60_v10 = vld [vmem:[%s5142_s5] sm:$0xff]  ;;  %v4236_v12 = vld [vmem:[%s5141_s4 + $0x10] sm:$0xff]  ;;  %v4243_v13 = vld [vmem:[%s5141_s4 + $0x8] sm:$0xff]  ;;  %s5163_s26 = sld [smem:[#allocation10_spill]]  ;;  %v4092_v16 = vmov 1966171168  }
   0xe   :  { %3521 = vmatpush3.msra.mxu1 %v155_v6  ;;  %3508 = vmatpush3.msra.mxu0 %v61_v7  ;;  %v4251_v14 = vld [vmem:[%s5141_s4] sm:$0xff]  ;;  %v439_v17 = vunpack.c.l.s4 %v4092_v16  ;;  %v4270_v20 = vshrl.u32 %v441_v18, 7  ;;  %v239_v47 = vld [vmem:[%s5145_s8 + $0x18] sm:$0xff]  ;;  %v238_v48 = vld [vmem:[%s5145_s8 + $0x10] sm:$0xff]  ;;  %s5164_s21 = sld [smem:[#allocation8_spill]]  ;;  %v489_v62 = vand.u32 127, %v441_v18 }
   0xf   :  { %3523 = vmatmul.mubr.msk.f32.vlgmr.msra.gmra.mxu1 %vm64_vm0, %v59_v8  ;;  %3536 = vmatprep.subr.mxu1 %v4090_v11  ;;  %v3298_v28 = vld [vmem:[%s5143_s6] ss:$0 sm:$0xff]  ;;  %v237_v50 = vld [vmem:[%s5145_s8 + $0x8] sm:$0xff]  ;;  %v4327_v53 = vld [vmem:[%s5147_s10 + $0x18] sm:$0xff]  ;;  %vm498_vm2 = vcmask 1041409   ;;  %vm501_vm3 = vcmask 58368  }
  0x10   :  { %3537 = vmatpush3.msra.mxu1 %v4226_v9  ;;  %3509 = vmatprep.subr.mxu0 %v60_v10  ;;  %v440_v19 = vunpack.c.0.s8 %v439_v17  ;;  %v4281_v27 = vsub.s32 0, %v4270_v20  ;;  %v4299_v40 = vld [vmem:[%s5144_s7] ss:$0 sm:$0xff]  ;;  %v4334_v54 = vld [vmem:[%s5147_s10 + $0x10] sm:$0xff]  ;;  %v4343_v55 = vld [vmem:[%s5147_s10 + $0x8] sm:$0xff]  ;;  %v4372_v63 = vsub.s32 %v489_v62, %v4270_v20  ;;  %v4093_v6 = vmov 0  }
  0x11   :  { %3538 = vmatprep.subr.mxu1 %v4090_v11  ;;  %3510 = vmatpush3.msra.mxu0 %v60_v10  ;;  %v236_v51 = vld [vmem:[%s5145_s8] sm:$0xff]  ;;  %s4095_s2 = smov 32   ;;  %vm658_vm4 = vcmask 523264   ;;  %vm939_vm5 = vcmask 1043459   ;;  %vm1332_vm6 = vcmask 1045509   ;;  %vm3133_vm7 = vcmask 1041408  }
  0x12   :  { %3539 = vmatpush3.msra.mxu1 %v4236_v12  ;;  %3511 = vmatprep.mubr.msk.f32.mxu0 %vm64_vm0, %v58_v2  ;;  %v4275_v22 = vsub.s32 %v440_v19, %v4270_v20  ;;  %v4350_v56 = vld [vmem:[%s5147_s10] sm:$0xff]  ;;  %vm3135_vm8 = vcmask 1043456   ;;  %vm1728_vm9 = vcmask 1047559   ;;  %vm3241_vm10 = vcmask 259076  }
  0x13   :  { %3540 = vmatprep.subr.mxu1 %v4090_v11  ;;  %3544 = vmatprep.mubr.msk.f32.mxu1 %vm4091_vm1, %v4090_v11  ;;  %v4260_v15 = vld [vmem:[%s5163_s26 + $0x2] sm:$0x3]  ;;  %v358_v57 = vld [vmem:[%s5163_s26] sm:$0x3]  ;;  %vm3137_vm11 = vcmask 1045504   ;;  %vm3247_vm12 = vcmask 254976  }
  0x14   :  { %3541 = vmatpush3.msra.mxu1 %v4243_v13  ;;  %3512 = vmatmul.mubr.msk.f32.vlgmr.msra.gmra.mxu0 %vm64_vm0, %v59_v8  ;;  %v234_v49 = vld [vmem:[%s5164_s21] sm:$0xff]  ;;  %v235_v52 = vld [vmem:[%s5164_s21 + $0x8] sm:$0x3f]  ;;  %v4379_v8 = vsub.s32 1, %v4270_v20 }
  0x15   :  { %3542 = vmatprep.subr.mxu1 %v4090_v11  ;;  %3525 = vmatprep.subr.mxu0 %v239_v47 }
  0x16   :  { %3543 = vmatpush3.msra.mxu1 %v4251_v14  ;;  %3526 = vmatpush3.msra.mxu0 %v239_v47 }
  0x17   :  { %3545 = vmatmul.mubr.msk.f32.vlgmr.msra.gmra.mxu1 %vm64_vm0, %v4260_v15  ;;  %3558 = vmatprep.subr.mxu1 %v4090_v11 }
  0x18   :  { %3574 = vmatprep.mubr.msk.f32.mxu1 %vm4091_vm1, %v4090_v11  ;;  %3533 = vmatprep.mubr.msk.f32.mxu0 %vm64_vm0, %v234_v49 }
  0x19   :  { %3527 = vmatprep.subr.mxu0 %v238_v48  ;;  %3845 = vset.pattern.permute.xlu0 %v4093_v6 }
  0x1a   :  { %3528 = vmatpush3.msra.mxu0 %v238_v48  ;;  %3844 = vset.pattern.permute.xlu1 %v4093_v6  ;;  %v4406_v6 = vld [vmem:[%s5149_s12 + $0x38] sm:$0xff] }
  0x1b   :  { %3529 = vmatprep.subr.mxu0 %v237_v50  ;;  %3559 = vmatpush3.msra.mxu1 %v4406_v6 }
  0x1c   :  { %3530 = vmatpush3.msra.mxu0 %v237_v50  ;;  %3560 = vmatprep.subr.mxu1 %v4090_v11 }
  0x1d   :  { %3531 = vmatprep.subr.mxu0 %v236_v51 }
  0x1e   :  { %3532 = vmatpush3.msra.mxu0 %v236_v51 }
  0x1f   :  { %3547 = vmatprep.subr.mxu0 %v4090_v11  ;;  %3534 = vmatmul.mubr.msk.f32.vlgmr.msra.gmra.mxu0 %vm64_vm0, %v235_v52 }
  0x20   :  { %3548 = vmatpush3.msra.mxu0 %v4327_v53  ;;  %3555 = vmatprep.mubr.msk.f32.mxu0 %vm4091_vm1, %v4090_v11 }
  0x21   :  { %3549 = vmatprep.subr.mxu0 %v4090_v11 }
  0x22   :  { %3550 = vmatpush3.msra.mxu0 %v4334_v54 }
  0x23   :  { %3551 = vmatprep.subr.mxu0 %v4090_v11 }
  0x24   :  { %3552 = vmatpush3.msra.mxu0 %v4343_v55 }
  0x25   :  { %3553 = vmatprep.subr.mxu0 %v4090_v11 }
  0x26   :  { %3554 = vmatpush3.msra.mxu0 %v4350_v56 }
  0x27   :  { %3556 = vmatmul.mubr.msk.f32.vlgmr.msra.gmra.mxu0 %vm64_vm0, %v358_v57  ;;  %3577 = vmatprep.subr.mxu0 %v4090_v11 }
  0x28   :  { %3578 = vmatpush3.msra.mxu0 %v4226_v9  ;;  %3585 = vmatprep.mubr.msk.f32.mxu0 %vm4091_vm1, %v4090_v11 }
  0x29   :  { %3579 = vmatprep.subr.mxu0 %v4090_v11 }
  0x2a   :  { %3580 = vmatpush3.msra.mxu0 %v4236_v12 }
  0x2b   :  { %3581 = vmatprep.subr.mxu0 %v4090_v11 }
  0x2c   :  { %3582 = vmatpush3.msra.mxu0 %v4243_v13 }
  0x2d   :  { %3583 = vmatprep.subr.mxu0 %v4090_v11 }
  0x2e   :  { %3584 = vmatpush3.msra.mxu0 %v4251_v14 }
  0x2f   :  { %3588 = vmatprep.subr.mxu0 %v4090_v11 }
  0xcf   :  { %v4272_v21 = vpop.f32.mrf.mxu1 }
  0xd1   :  { %v4277_v23 = vpop.f32.mrf.mxu1 }
  0xd4   :  { %v3513_v24 = vpop.f32.mrf.mxu0 }
  0xd5   :  { %v4291_v36 = vadd.f32 %v3513_v24, %v3298_v28 }
  0xd6   :  { %v137_v29 = vpop.f32.mrf.mxu0 }
  0xd7   :  { %v433_v25 = vpop.f32.mrf.mxu1  ;;  %v4289_v35 = vadd.f32 %v3298_v28, %v137_v29 }
  0xd8   :  { %v444_v26 = vrot.slane %v433_v25, %v4275_v22  ;;  %v3301_v25 = vld [vmem:[%s5148_s11] ss:$0 sm:$0xff]  ;;  %s4094_s11 = smov 64  }
  0xd9   :  { %v3546_v30 = vpop.f32.mrf.mxu1 }
  0xda   :  { %v445_v31 = vcombine.high %v444_v26, %v444_v26  ;;  %v452_v32 = vrot.slane %v444_v26, %v4275_v22 }
  0xdc   :  { %v459_v33 = vrot.slane %v445_v31, %v4275_v22  ;;  %v463_v34 = vrot.slane %v452_v32, %v4281_v27 }
  0xde   :  { %v467_v37 = vrot.slane %v459_v33, %v4281_v27  ;;  %v470_v38 = vadd.f32 %v463_v34, %v4289_v35 }
  0xdf   :  { %v3535_v24 = vpop.f32.mrf.mxu0 }
  0xe0   :  { %v471_v39 = vadd.f32 %v467_v37, %v4291_v36  ;;  %3846 = vtanh.f32 %v470_v38  ;;  %v4386_v26 = vadd.f32 %v3535_v24, %v3301_v25  ;;  %v4447_v24 = vld [vmem:[%s5149_s12 + $0x8] sm:$0xff] }
  0xe1   :  { %v319_v28 = vpop.f32.mrf.mxu0 }
  0xe2   :  { %3848 = vtanh.f32 %v471_v39  ;;  %v4390_v49 = vadd.f32 %v3301_v25, %v319_v28  ;;  %v4456_v25 = vld [vmem:[%s5149_s12] sm:$0xff] }
  0xe7   :  { %v617_v29 = vpop.f32.mrf.mxu0 }
  0xe9   :  { %v3557_v20 = vpop.f32.mrf.mxu0 }
  0xed   :  { %v3847_v41 = vpop.eup %3846 }
  0xee   :  { %v474_v42 = vmul.f32 %v3847_v41, %v4299_v40 }
  0xef   :  { %v3849_v43 = vpop.eup %3848 }
  0xf0   :  { %v476_v44 = vsel %vm64_vm0, %v474_v42, 0.0  ;;  %v475_v45 = vmul.f32 %v3849_v43, %v4299_v40 }
  0xf1   :  { %477 = vadd.xlane.f32.xlu0 %v476_v44 }
  0xf2   :  { %v479_v46 = vsel %vm64_vm0, %v475_v45, 0.0 }
  0xf5   :  { %480 = vadd.xlane.f32.xlu0 %v479_v46 }
 0x17a   :  { %v478_v58 = vpop.xlane.xlu0 %477 }
 0x17b   :  { %v482_v59 = vmul.f32 1.442695, %v478_v58  ;;  %v361_v58 = vld [vmem:[%s5140_s3] sm:$0x3] }
 0x17d   :  { %3850 = vpow2.f32 %v482_v59 }
 0x17e   :  { %v481_v60 = vpop.xlane.xlu0 %480 }
 0x17f   :  { %v484_v61 = vmul.f32 1.442695, %v481_v60 }
 0x181   :  { %3852 = vpow2.f32 %v484_v61 }
 0x18a   :  { %v3851_v0 = vpop.eup %3850 }
 0x18b   :  { %v493_v2 = vrot.slane %v3851_v0, %v4372_v63 }
 0x18e   :  { %v3853_v1 = vpop.eup %3852 }
 0x18f   :  { %v497_v3 = vrot.slane %v3853_v1, %v4372_v63 }
 0x191   :  { %v499_v4 = vsel %vm498_vm2, %v497_v3, %v493_v2 }
 0x192   :  { %v502_v5 = vsel %vm501_vm3, %v499_v4, 0.0 }
 0x193   :  { %503 = vadd.xlane.f32.xlu1 %v502_v5 }
 0x21c   :  { %v504_v7 = vpop.xlane.xlu1 %503 }
 0x21d   :  { %3854 = vrcp.f32 %v504_v7  ;;  %v4411_v7 = vld [vmem:[%s5149_s12 + $0x30] sm:$0xff] }
 0x21e   :  { %3561 = vmatpush3.msra.mxu1 %v4411_v7 }
 0x21f   :  { %3562 = vmatprep.subr.mxu1 %v4090_v11 }
 0x22a   :  { %v3855_v10 = vpop.eup %3854 }
 0x22b   :  { %v514_v16 = vrot.slane %v3855_v10, %v4379_v8  ;;  %v510_v17 = vrot.slane %v3855_v10, %v4281_v27  ;;  %v4418_v10 = vld [vmem:[%s5149_s12 + $0x28] sm:$0xff] }
 0x22c   :  { %3563 = vmatpush3.msra.mxu1 %v4418_v10 }
 0x22d   :  { %v518_v18 = vmul.f32 %v3853_v1, %v514_v16  ;;  %v517_v19 = vmul.f32 %v3851_v0, %v510_v17  ;;  %v4425_v16 = vld [vmem:[%s5149_s12 + $0x20] sm:$0xff]  ;;  %3564 = vmatprep.subr.mxu1 %v4090_v11 }
 0x22e   :  { %3565 = vmatpush3.msra.mxu1 %v4425_v16 }
 0x22f   :  { %526 = vperm.xlu0 %3845, %v518_v18   ;;  %521 = vperm.xlu1 %3844, %v517_v19   ;;  %v4432_v18 = vld [vmem:[%s5149_s12 + $0x18] sm:$0xff]  ;;  %v4442_v19 = vld [vmem:[%s5149_s12 + $0x10] sm:$0xff] }
 0x230   :  { %3566 = vmatprep.subr.mxu1 %v4090_v11 }
 0x231   :  { %3567 = vmatpush3.msra.mxu1 %v4432_v18 }
 0x232   :  { %3568 = vmatprep.subr.mxu1 %v4090_v11 }
 0x233   :  { %3569 = vmatpush3.msra.mxu1 %v4442_v19 }
 0x234   :  { %3570 = vmatprep.subr.mxu1 %v4090_v11 }
 0x235   :  { %3571 = vmatpush3.msra.mxu1 %v4447_v24 }
 0x236   :  { %3572 = vmatprep.subr.mxu1 %v4090_v11 }
 0x237   :  { %3573 = vmatpush3.msra.mxu1 %v4456_v25 }
 0x238   :  { %3599 = vmatprep.subr.mxu1 %v4090_v11 }
 0x2aa   :  { %v527_v30 = vpop.permute.xlu0 %526  ;;  %v522_v31 = vpop.permute.xlu1 %521 }
 0x2ab   :  { %v530_v32 = vmul.f32 %v4272_v21, %v527_v30  ;;  %v529_v33 = vmul.f32 %v522_v31, %v4277_v23 }
 0x2ad   :  { %v537_v34 = vrot.slane %v530_v32, 4  ;;  %v531_v37 = vrot.slane %v529_v33, 4 }
 0x2af   :  { %v538_v38 = vadd.f32 %v537_v34, %v530_v32  ;;  %v532_v39 = vadd.f32 %v531_v37, %v529_v33 }
 0x2b1   :  { %v539_v41 = vrot.slane %v538_v38, 2  ;;  %v533_v42 = vrot.slane %v532_v39, 2 }
 0x2b3   :  { %v540_v43 = vadd.f32 %v539_v41, %v538_v38  ;;  %v534_v44 = vadd.f32 %v533_v42, %v532_v39  ;;  %v3307_v38 = vld [vmem:[%s5140_s3 + $0x2] sm:$0x3]  ;;  %s4098_s3 = smov [#allocation4]  }
 0x2b4   :  { %s3279_s24 = sshll.u32 %s4098_s3, 4  ;;  %s3280_s24 = int_to_ptr.vmem [resolvable:$true] %s3279_s24 }
 0x2b5   :  { %v541_v45 = vrot.slane %v540_v43, 1  ;;  %v535_v46 = vrot.slane %v534_v44, 1 }
 0x2b7   :  { %v542_v47 = vadd.f32 %v541_v45, %v540_v43  ;;  %v536_v48 = vadd.f32 %v535_v46, %v534_v44 }
 0x2b9   :  { %v545_v50 = vsel %vm498_vm2, %v542_v47, %v536_v48 }
 0x2ba   :  { %v547_v51 = vadd.f32 %v545_v50, %v4390_v49 }
 0x2bc   :  { %v621_v52 = vadd.f32 %v617_v29, %v547_v51 }
 0x2be   :  { %3856 = vtanh.f32 %v621_v52  ;;  %v3310_v59 = vmul.f32 -1.442695, %v621_v52 }
 0x2c0   :  { %3858 = vpow2.f32 %v3310_v59 }
 0x2cb   :  { %v3857_v57 = vpop.eup %3856 }
 0x2cc   :  { %635 = vrot.lane.b32.xlu1 %v3857_v57, %s4094_s11 }
 0x2cd   :  { %v3859_v60 = vpop.eup %3858 }
 0x2ce   :  { %v625_v61 = vadd.f32 1.0, %v3859_v60 }
 0x2d0   :  { %630 = vrot.lane.b32.xlu1 %v361_v58, %s4095_s2  ;;  %3860 = vrcp.f32 %v625_v61 }
 0x2dd   :  { %v3861_v62 = vpop.eup %3860 }
 0x33e   :  { %v636_v0 = vpop.permute.xlu1 %635 }
 0x33f   :  { %v638_v1 = vmul.f32 %v3861_v62, %v636_v0 }
 0x341   :  { %640 = vrot.lane.b32.xlu1 %v638_v1, %s4095_s2 }
 0x342   :  { %v631_v2 = vpop.permute.xlu1 %630 }
 0x343   :  { %v633_v3 = vmul.f32 %v3861_v62, %v631_v2 }
 0x3b3   :  { %v641_v4 = vpop.permute.xlu1 %640 }
 0x3b4   :  { %v4400_v5 = vadd.f32 %v641_v4, %v633_v3 }
 0x3b6   :  { %3862 = vtanh.f32 %v4400_v5 }
 0x3c3   :  { %v3863_v17 = vpop.eup %3862 }
 0x3c4   :  { %646 = vrot.lane.b32.xlu1 %v3863_v17, %s4094_s11 }
 0x436   :  { %v647_v28 = vpop.permute.xlu1 %646 }
 0x437   :  { %v649_v29 = vmul.f32 %v3861_v62, %v647_v28 }
 0x439   :  { %651 = vrot.lane.b32.xlu1 %v649_v29, %s4095_s2 }
 0x43d   :  { %654 = vrot.lane.b32.xlu1 %v4260_v15, %s4095_s2  ;;  %v4486_v15 = vld [vmem:[%s5150_s13] ss:$0 sm:$0xff] }
 0x4ab   :  { %v652_v20 = vpop.permute.xlu1 %651 }
 0x4af   :  { %v655_v30 = vpop.permute.xlu1 %654 }
 0x4b0   :  { %v657_v31 = vsel %vm64_vm0, %v652_v20, %v655_v30 }
 0x4b1   :  { %3575 = vmatmul.mubr.msk.f32.vlgmr.msra.gmra.mxu1 %vm658_vm4, %v657_v31 }
 0x4b2   :  { %3600 = vmatpush3.msra.mxu1 %v4406_v6  ;;  %3615 = vmatprep.mubr.msk.f32.mxu1 %vm4091_vm1, %v4090_v11 }
 0x4b3   :  { %3601 = vmatprep.subr.mxu1 %v4090_v11 }
 0x4b4   :  { %3602 = vmatpush3.msra.mxu1 %v4411_v7 }
 0x4b5   :  { %3603 = vmatprep.subr.mxu1 %v4090_v11 }
 0x4b6   :  { %3604 = vmatpush3.msra.mxu1 %v4418_v10 }
 0x4b7   :  { %3605 = vmatprep.subr.mxu1 %v4090_v11 }
 0x4b8   :  { %3606 = vmatpush3.msra.mxu1 %v4425_v16 }
 0x4b9   :  { %3607 = vmatprep.subr.mxu1 %v4090_v11 }
 0x4ba   :  { %3608 = vmatpush3.msra.mxu1 %v4432_v18 }
 0x4bb   :  { %3609 = vmatprep.subr.mxu1 %v4090_v11 }
 0x4bc   :  { %3610 = vmatpush3.msra.mxu1 %v4442_v19 }
 0x4bd   :  { %3611 = vmatprep.subr.mxu1 %v4090_v11 }
 0x4be   :  { %3612 = vmatpush3.msra.mxu1 %v4447_v24 }
 0x4bf   :  { %3613 = vmatprep.subr.mxu1 %v4090_v11 }
 0x4c0   :  { %3614 = vmatpush3.msra.mxu1 %v4456_v25 }
 0x4c1   :  { %3640 = vmatprep.subr.mxu1 %v4090_v11 }
 0x571   :  { %v728_v32 = vpop.f32.mrf.mxu1 }
 0x572   :  { %v729_v33 = vadd.f32 %v4486_v15, %v728_v32 }
 0x573   :  { %v3576_v34 = vpop.f32.mrf.mxu1 }
 0x574   :  { %3864 = vtanh.f32 %v729_v33  ;;  %v3312_v39 = vmul.f32 -1.442695, %v729_v33 }
 0x576   :  { %3866 = vpow2.f32 %v3312_v39 }
 0x581   :  { %v3865_v37 = vpop.eup %3864 }
 0x582   :  { %745 = vrot.lane.b32.xlu1 %v3865_v37, %s4094_s11 }
 0x583   :  { %v3867_v41 = vpop.eup %3866 }
 0x584   :  { %v735_v42 = vadd.f32 1.0, %v3867_v41 }
 0x586   :  { %740 = vrot.lane.b32.xlu1 %v3307_v38, %s4095_s2  ;;  %3868 = vrcp.f32 %v735_v42 }
 0x593   :  { %v3869_v43 = vpop.eup %3868 }
 0x5f4   :  { %v746_v44 = vpop.permute.xlu1 %745 }
 0x5f5   :  { %v748_v45 = vmul.f32 %v3869_v43, %v746_v44 }
 0x5f7   :  { %750 = vrot.lane.b32.xlu0 %v748_v45, %s4095_s2 }
 0x5f8   :  { %v741_v46 = vpop.permute.xlu1 %740 }
 0x5f9   :  { %v743_v47 = vmul.f32 %v3869_v43, %v741_v46 }
 0x669   :  { %v751_v48 = vpop.permute.xlu0 %750 }
 0x66a   :  { %v4495_v50 = vadd.f32 %v751_v48, %v743_v47 }
 0x66c   :  { %3870 = vtanh.f32 %v4495_v50 }
 0x679   :  { %v3871_v51 = vpop.eup %3870 }
 0x67a   :  { %756 = vrot.lane.b32.xlu1 %v3871_v51, %s4094_s11 }
 0x6ec   :  { %v757_v52 = vpop.permute.xlu1 %756 }
 0x6ed   :  { %v4499_v57 = vmul.f32 %v3869_v43, %v757_v52 }
 0x6ef   :  { %761 = vrot.lane.b32.xlu0 %v4499_v57, %s4095_s2 }
 0x761   :  { %v762_v58 = vpop.permute.xlu0 %761 }
 0x762   :  { %3586 = vmatmul.mubr.msk.f32.vlgmr.msra.gmra.mxu0 %vm64_vm0, %v762_v58 }
 0x763   :  { %3589 = vmatpush3.msra.mxu0 %v4327_v53  ;;  %3596 = vmatprep.mubr.msk.f32.mxu0 %vm4091_vm1, %v4090_v11 }
 0x764   :  { %3590 = vmatprep.subr.mxu0 %v4090_v11 }
 0x765   :  { %3591 = vmatpush3.msra.mxu0 %v4334_v54 }
 0x766   :  { %3592 = vmatprep.subr.mxu0 %v4090_v11 }
 0x767   :  { %3593 = vmatpush3.msra.mxu0 %v4343_v55 }
 0x768   :  { %3594 = vmatprep.subr.mxu0 %v4090_v11 }
 0x769   :  { %3595 = vmatpush3.msra.mxu0 %v4350_v56 }
 0x76a   :  { %3597 = vmatmul.mubr.msk.f32.vlgmr.msra.gmra.mxu0 %vm64_vm0, %v652_v20  ;;  %3618 = vmatprep.subr.mxu0 %v4090_v11 }
 0x76b   :  { %3619 = vmatpush3.msra.mxu0 %v4226_v9  ;;  %3626 = vmatprep.mubr.msk.f32.mxu0 %vm4091_vm1, %v4090_v11 }
 0x76c   :  { %3620 = vmatprep.subr.mxu0 %v4090_v11 }
 0x76d   :  { %3621 = vmatpush3.msra.mxu0 %v4236_v12 }
 0x76e   :  { %3622 = vmatprep.subr.mxu0 %v4090_v11 }
 0x76f   :  { %3623 = vmatpush3.msra.mxu0 %v4243_v13 }
 0x770   :  { %3624 = vmatprep.subr.mxu0 %v4090_v11 }
 0x771   :  { %3625 = vmatpush3.msra.mxu0 %v4251_v14 }
 0x772   :  { %3629 = vmatprep.subr.mxu0 %v4090_v11 }
 0x822   :  { %v831_v59 = vpop.f32.mrf.mxu0 }
 0x823   :  { %v842_v60 = vrot.slane %v831_v59, %v4275_v22 }
 0x824   :  { %v3587_v61 = vpop.f32.mrf.mxu0 }
 0x825   :  { %v843_v62 = vcombine.high %v842_v60, %v842_v60  ;;  %v850_v0 = vrot.slane %v842_v60, %v4275_v22 }
 0x827   :  { %v857_v1 = vrot.slane %v843_v62, %v4275_v22  ;;  %v861_v2 = vrot.slane %v850_v0, %v4281_v27 }
 0x829   :  { %v865_v3 = vrot.slane %v857_v1, %v4281_v27  ;;  %v868_v4 = vadd.f32 %v861_v2, %v4289_v35 }
 0x82a   :  { %v1011_v17 = vpop.f32.mrf.mxu0 }
 0x82b   :  { %v869_v28 = vadd.f32 %v865_v3, %v4291_v36  ;;  %3872 = vtanh.f32 %v868_v4 }
 0x82c   :  { %v3598_v29 = vpop.f32.mrf.mxu0 }
 0x82d   :  { %3874 = vtanh.f32 %v869_v28 }
 0x838   :  { %v3873_v20 = vpop.eup %3872 }
 0x839   :  { %v872_v30 = vmul.f32 %v3873_v20, %v4299_v40 }
 0x83a   :  { %v3875_v31 = vpop.eup %3874 }
 0x83b   :  { %v874_v32 = vsel %vm64_vm0, %v872_v30, 0.0  ;;  %v873_v33 = vmul.f32 %v3875_v31, %v4299_v40 }
 0x83c   :  { %875 = vadd.xlane.f32.xlu1 %v874_v32 }
 0x83d   :  { %v877_v34 = vsel %vm64_vm0, %v873_v33, 0.0 }
 0x83e   :  { %878 = vadd.xlane.f32.xlu0 %v877_v34 }
 0x8c5   :  { %v876_v37 = vpop.xlane.xlu1 %875 }
 0x8c6   :  { %v880_v38 = vmul.f32 1.442695, %v876_v37 }
 0x8c7   :  { %v879_v39 = vpop.xlane.xlu0 %878 }
 0x8c8   :  { %3876 = vpow2.f32 %v880_v38  ;;  %v882_v41 = vmul.f32 1.442695, %v879_v39  ;;  %v1016_v39 = vrot.slane %v1011_v17, 6 }
 0x8ca   :  { %3878 = vpow2.f32 %v882_v41 }
 0x8d5   :  { %v3877_v42 = vpop.eup %3876 }
 0x8d6   :  { %v889_v44 = vrot.slane %v3877_v42, %v4372_v63 }
 0x8d7   :  { %v3879_v43 = vpop.eup %3878 }
 0x8d8   :  { %v893_v45 = vrot.slane %v3879_v43, %v4372_v63 }
 0x8da   :  { %v894_v46 = vsel %vm498_vm2, %v893_v45, %v889_v44 }
 0x8db   :  { %v896_v47 = vsel %vm501_vm3, %v894_v46, 0.0 }
 0x8dc   :  { %897 = vadd.xlane.f32.xlu0 %v896_v47 }
 0x965   :  { %v898_v48 = vpop.xlane.xlu0 %897 }
 0x966   :  { %3880 = vrcp.f32 %v898_v48 }
 0x973   :  { %v3881_v51 = vpop.eup %3880 }
 0x974   :  { %v908_v52 = vrot.slane %v3881_v51, %v4379_v8  ;;  %v904_v58 = vrot.slane %v3881_v51, %v4281_v27 }
 0x976   :  { %v912_v59 = vmul.f32 %v3879_v43, %v908_v52  ;;  %v911_v60 = vmul.f32 %v3877_v42, %v904_v58  ;;  %v1027_v52 = vrot.slane %v4400_v5, 6 }
 0x978   :  { %920 = vperm.xlu0 %3845, %v912_v59   ;;  %915 = vperm.xlu1 %3844, %v911_v60  }
 0x9f3   :  { %v921_v61 = vpop.permute.xlu0 %920  ;;  %v916_v62 = vpop.permute.xlu1 %915 }
 0x9f4   :  { %v924_v0 = vmul.f32 %v4272_v21, %v921_v61  ;;  %v923_v1 = vmul.f32 %v916_v62, %v4277_v23  ;;  %v1050_v61 = vrot.slane %v4499_v57, 6 }
 0x9f6   :  { %v931_v2 = vrot.slane %v924_v0, 4  ;;  %v925_v3 = vrot.slane %v923_v1, 4 }
 0x9f8   :  { %v932_v4 = vadd.f32 %v931_v2, %v924_v0  ;;  %v926_v28 = vadd.f32 %v925_v3, %v923_v1 }
 0x9fa   :  { %v933_v29 = vrot.slane %v932_v4, 2  ;;  %v927_v20 = vrot.slane %v926_v28, 2 }
 0x9fc   :  { %v934_v30 = vadd.f32 %v933_v29, %v932_v4  ;;  %v928_v31 = vadd.f32 %v927_v20, %v926_v28 }
 0x9fe   :  { %v935_v32 = vrot.slane %v934_v30, 1  ;;  %v929_v33 = vrot.slane %v928_v31, 1 }
 0xa00   :  { %v936_v34 = vadd.f32 %v935_v32, %v934_v30  ;;  %v930_v37 = vadd.f32 %v929_v33, %v928_v31 }
 0xa02   :  { %v940_v38 = vsel %vm939_vm5, %v936_v34, %v930_v37 }
 0xa03   :  { %v942_v41 = vadd.f32 %v940_v38, %v4390_v49 }
 0xa05   :  { %v1018_v42 = vadd.f32 %v1016_v39, %v942_v41 }
 0xa07   :  { %3882 = vtanh.f32 %v1018_v42  ;;  %v3315_v44 = vmul.f32 -1.442695, %v1018_v42 }
 0xa09   :  { %3884 = vpow2.f32 %v3315_v44 }
 0xa14   :  { %v3883_v43 = vpop.eup %3882 }
 0xa15   :  { %1031 = vrot.lane.b32.xlu1 %v3883_v43, %s4094_s11 }
 0xa16   :  { %v3885_v45 = vpop.eup %3884 }
 0xa17   :  { %v1022_v46 = vadd.f32 1.0, %v3885_v45 }
 0xa19   :  { %3886 = vrcp.f32 %v1022_v46 }
 0xa26   :  { %v3887_v47 = vpop.eup %3886 }
 0xa27   :  { %v1029_v17 = vmul.f32 %v3887_v47, %v1027_v52 }
 0xa87   :  { %v1032_v48 = vpop.permute.xlu1 %1031 }
 0xa88   :  { %v1034_v51 = vmul.f32 %v3887_v47, %v1032_v48 }
 0xa8a   :  { %1036 = vrot.lane.b32.xlu1 %v1034_v51, %s4095_s2 }
 0xafc   :  { %v1037_v58 = vpop.permute.xlu1 %1036 }
 0xafd   :  { %v4549_v59 = vadd.f32 %v1037_v58, %v1029_v17 }
 0xaff   :  { %3888 = vtanh.f32 %v4549_v59 }
 0xb0c   :  { %v3889_v60 = vpop.eup %3888 }
 0xb0d   :  { %1042 = vrot.lane.b32.xlu0 %v3889_v60, %s4094_s11 }
 0xb11   :  { %1051 = vrot.lane.b32.xlu0 %v1050_v61, %s4094_s11 }
 0xb7f   :  { %v1043_v62 = vpop.permute.xlu0 %1042 }
 0xb80   :  { %v4555_v0 = vmul.f32 %v3887_v47, %v1043_v62 }
 0xb82   :  { %1047 = vrot.lane.b32.xlu1 %v4555_v0, %s4095_s2 }
 0xb83   :  { %v1052_v5 = vpop.permute.xlu0 %1051 }
 0xbf4   :  { %v1048_v1 = vpop.permute.xlu1 %1047 }
 0xbf5   :  { %v1054_v2 = vsel %vm64_vm0, %v1048_v1, %v1052_v5 }
 0xbf6   :  { %v1056_v3 = vrot.slane %v1054_v2, 2 }
 0xbf8   :  { %3616 = vmatmul.mubr.msk.f32.vlgmr.msra.gmra.mxu1 %vm658_vm4, %v1056_v3 }
 0xbf9   :  { %3641 = vmatpush3.msra.mxu1 %v4406_v6  ;;  %3656 = vmatprep.mubr.msk.f32.mxu1 %vm4091_vm1, %v4090_v11 }
 0xbfa   :  { %3642 = vmatprep.subr.mxu1 %v4090_v11 }
 0xbfb   :  { %3643 = vmatpush3.msra.mxu1 %v4411_v7 }
 0xbfc   :  { %3644 = vmatprep.subr.mxu1 %v4090_v11 }
 0xbfd   :  { %3645 = vmatpush3.msra.mxu1 %v4418_v10 }
 0xbfe   :  { %3646 = vmatprep.subr.mxu1 %v4090_v11 }
 0xbff   :  { %3647 = vmatpush3.msra.mxu1 %v4425_v16 }
 0xc00   :  { %3648 = vmatprep.subr.mxu1 %v4090_v11 }
 0xc01   :  { %3649 = vmatpush3.msra.mxu1 %v4432_v18 }
 0xc02   :  { %3650 = vmatprep.subr.mxu1 %v4090_v11 }
 0xc03   :  { %3651 = vmatpush3.msra.mxu1 %v4442_v19 }
 0xc04   :  { %3652 = vmatprep.subr.mxu1 %v4090_v11 }
 0xc05   :  { %3653 = vmatpush3.msra.mxu1 %v4447_v24 }
 0xc06   :  { %3654 = vmatprep.subr.mxu1 %v4090_v11 }
 0xc07   :  { %3655 = vmatpush3.msra.mxu1 %v4456_v25 }
 0xc08   :  { %3681 = vmatprep.subr.mxu1 %v4090_v11 }
 0xcb8   :  { %v1125_v4 = vpop.f32.mrf.mxu1 }
 0xcb9   :  { %v1126_v28 = vadd.f32 %v4486_v15, %v1125_v4 }
 0xcba   :  { %v3617_v29 = vpop.f32.mrf.mxu1 }
 0xcbb   :  { %3890 = vtanh.f32 %v1126_v28  ;;  %v3317_v30 = vmul.f32 -1.442695, %v1126_v28  ;;  %v1336_v28 = vrot.slane %v4555_v0, 2 }
 0xcbd   :  { %3892 = vpow2.f32 %v3317_v30 }
 0xcc8   :  { %v3891_v20 = vpop.eup %3890 }
 0xcc9   :  { %1138 = vrot.lane.b32.xlu1 %v3891_v20, %s4094_s11 }
 0xcca   :  { %v3893_v31 = vpop.eup %3892 }
 0xccb   :  { %v1132_v32 = vadd.f32 1.0, %v3893_v31 }
 0xccd   :  { %3894 = vrcp.f32 %v1132_v32 }
 0xcda   :  { %v3895_v33 = vpop.eup %3894 }
 0xcdb   :  { %v1136_v38 = vmul.f32 %v3895_v33, %v4495_v50 }
 0xd3b   :  { %v1139_v34 = vpop.permute.xlu1 %1138 }
 0xd3c   :  { %v1141_v37 = vmul.f32 %v3895_v33, %v1139_v34 }
 0xd3e   :  { %1143 = vrot.lane.b32.xlu0 %v1141_v37, %s4095_s2 }
 0xdb0   :  { %v1144_v39 = vpop.permute.xlu0 %1143 }
 0xdb1   :  { %v4583_v41 = vadd.f32 %v1144_v39, %v1136_v38 }
 0xdb3   :  { %3896 = vtanh.f32 %v4583_v41 }
 0xdc0   :  { %v3897_v42 = vpop.eup %3896 }
 0xdc1   :  { %1149 = vrot.lane.b32.xlu1 %v3897_v42, %s4094_s11 }
 0xe33   :  { %v1150_v43 = vpop.permute.xlu1 %1149 }
 0xe34   :  { %v4587_v44 = vmul.f32 %v3895_v33, %v1150_v43 }
 0xe36   :  { %1154 = vrot.lane.b32.xlu0 %v4587_v44, %s4095_s2 }
 0xea8   :  { %v1155_v45 = vpop.permute.xlu0 %1154 }
 0xea9   :  { %3627 = vmatmul.mubr.msk.f32.vlgmr.msra.gmra.mxu0 %vm64_vm0, %v1155_v45 }
 0xeaa   :  { %3630 = vmatpush3.msra.mxu0 %v4327_v53  ;;  %3637 = vmatprep.mubr.msk.f32.mxu0 %vm4091_vm1, %v4090_v11 }
 0xeab   :  { %3631 = vmatprep.subr.mxu0 %v4090_v11 }
 0xeac   :  { %3632 = vmatpush3.msra.mxu0 %v4334_v54 }
 0xead   :  { %3633 = vmatprep.subr.mxu0 %v4090_v11 }
 0xeae   :  { %3634 = vmatpush3.msra.mxu0 %v4343_v55 }
 0xeaf   :  { %3635 = vmatprep.subr.mxu0 %v4090_v11 }
 0xeb0   :  { %3636 = vmatpush3.msra.mxu0 %v4350_v56 }
 0xeb1   :  { %3659 = vmatprep.subr.mxu0 %v4090_v11 }
 0xf69   :  { %v1224_v50 = vpop.f32.mrf.mxu0 }
 0xf6a   :  { %v1235_v46 = vrot.slane %v1224_v50, %v4275_v22 }
 0xf6b   :  { %v3628_v47 = vpop.f32.mrf.mxu0 }
 0xf6c   :  { %v1236_v48 = vcombine.high %v1235_v46, %v1235_v46  ;;  %v1243_v51 = vrot.slane %v1235_v46, %v4275_v22 }
 0xf6e   :  { %v1250_v52 = vrot.slane %v1236_v48, %v4275_v22  ;;  %v1254_v17 = vrot.slane %v1243_v51, %v4281_v27 }
 0xf70   :  { %v1258_v58 = vrot.slane %v1250_v52, %v4281_v27  ;;  %v1261_v60 = vadd.f32 %v1254_v17, %v4289_v35 }
 0xf72   :  { %v1262_v61 = vadd.f32 %v1258_v58, %v4291_v36  ;;  %3898 = vtanh.f32 %v1261_v60 }
 0xf74   :  { %3900 = vtanh.f32 %v1262_v61 }
 0xf7f   :  { %v3899_v62 = vpop.eup %3898 }
 0xf80   :  { %v1265_v5 = vmul.f32 %v3899_v62, %v4299_v40 }
 0xf81   :  { %v3901_v1 = vpop.eup %3900 }
 0xf82   :  { %v1267_v2 = vsel %vm64_vm0, %v1265_v5, 0.0  ;;  %v1266_v3 = vmul.f32 %v3901_v1, %v4299_v40 }
 0xf83   :  { %1268 = vadd.xlane.f32.xlu1 %v1267_v2 }
 0xf84   :  { %v1270_v4 = vsel %vm64_vm0, %v1266_v3, 0.0 }
 0xf85   :  { %1271 = vadd.xlane.f32.xlu0 %v1270_v4 }
 0xf9b   :  { %1337 = vrot.lane.b32.xlu0 %v1336_v28, %s4095_s2 }
0x100c   :  { %v1269_v29 = vpop.xlane.xlu1 %1268 }
0x100d   :  { %v1273_v20 = vmul.f32 1.442695, %v1269_v29 }
0x100e   :  { %v1272_v30 = vpop.xlane.xlu0 %1271 }
0x100f   :  { %3902 = vpow2.f32 %v1273_v20  ;;  %v1275_v31 = vmul.f32 1.442695, %v1272_v30 }
0x1011   :  { %3904 = vpow2.f32 %v1275_v31 }
0x1012   :  { %v1338_v32 = vpop.permute.xlu0 %1337 }
0x1013   :  { %3638 = vmatmul.mubr.msk.f32.vlgmr.msra.gmra.mxu0 %vm64_vm0, %v1338_v32 }
0x1014   :  { %3660 = vmatpush3.msra.mxu0 %v4226_v9  ;;  %3667 = vmatprep.mubr.msk.f32.mxu0 %vm4091_vm1, %v4090_v11 }
0x1015   :  { %3661 = vmatprep.subr.mxu0 %v4090_v11 }
0x1016   :  { %3662 = vmatpush3.msra.mxu0 %v4236_v12 }
0x1017   :  { %3663 = vmatprep.subr.mxu0 %v4090_v11 }
0x1018   :  { %3664 = vmatpush3.msra.mxu0 %v4243_v13 }
0x1019   :  { %3665 = vmatprep.subr.mxu0 %v4090_v11 }
0x101a   :  { %3666 = vmatpush3.msra.mxu0 %v4251_v14 }
0x101b   :  { %3670 = vmatprep.subr.mxu0 %v4090_v11 }
0x101c   :  { %v3903_v40 = vpop.eup %3902 }
0x101d   :  { %v1282_v9 = vrot.slane %v3903_v40, %v4372_v63 }
0x101e   :  { %v3905_v0 = vpop.eup %3904 }
0x101f   :  { %v1286_v33 = vrot.slane %v3905_v0, %v4372_v63 }
0x1021   :  { %v1287_v34 = vsel %vm498_vm2, %v1286_v33, %v1282_v9 }
0x1022   :  { %v1289_v12 = vsel %vm501_vm3, %v1287_v34, 0.0 }
0x1023   :  { %1290 = vadd.xlane.f32.xlu1 %v1289_v12  ;;  %v1423_v12 = vrot.slane %v4549_v59, 6 }
0x10ac   :  { %v1291_v37 = vpop.xlane.xlu1 %1290 }
0x10ad   :  { %3906 = vrcp.f32 %v1291_v37 }
0x10ba   :  { %v3907_v13 = vpop.eup %3906 }
0x10bb   :  { %v1301_v38 = vrot.slane %v3907_v13, %v4379_v8  ;;  %v1297_v14 = vrot.slane %v3907_v13, %v4281_v27 }
0x10bd   :  { %v1305_v39 = vmul.f32 %v3905_v0, %v1301_v38  ;;  %v1304_v42 = vmul.f32 %v3903_v40, %v1297_v14 }
0x10bf   :  { %1313 = vperm.xlu0 %3845, %v1305_v39   ;;  %1308 = vperm.xlu1 %3844, %v1304_v42   ;;  %v1446_v39 = vrot.slane %v4587_v44, 4 }
0x10d3   :  { %v1407_v43 = vpop.f32.mrf.mxu0 }
0x10d4   :  { %v1412_v29 = vrot.slane %v1407_v43, 4 }
0x10d5   :  { %v3639_v45 = vpop.f32.mrf.mxu0 }
0x113a   :  { %v1309_v50 = vpop.permute.xlu1 %1308  ;;  %v1314_v46 = vpop.permute.xlu0 %1313 }
0x113b   :  { %v1316_v47 = vmul.f32 %v1309_v50, %v4277_v23  ;;  %v1317_v48 = vmul.f32 %v4272_v21, %v1314_v46 }
0x113d   :  { %v1318_v51 = vrot.slane %v1316_v47, 4  ;;  %v1324_v52 = vrot.slane %v1317_v48, 4 }
0x113f   :  { %v1319_v17 = vadd.f32 %v1318_v51, %v1316_v47  ;;  %v1325_v58 = vadd.f32 %v1324_v52, %v1317_v48 }
0x1141   :  { %v1320_v60 = vrot.slane %v1319_v17, 2  ;;  %v1326_v61 = vrot.slane %v1325_v58, 2 }
0x1143   :  { %v1321_v62 = vadd.f32 %v1320_v60, %v1319_v17  ;;  %v1327_v5 = vadd.f32 %v1326_v61, %v1325_v58  ;;  %v3122_v61 = vrot.slane %v4587_v44, 6 }
0x1145   :  { %v1322_v1 = vrot.slane %v1321_v62, 1  ;;  %v1328_v2 = vrot.slane %v1327_v5, 1 }
0x1147   :  { %v1323_v3 = vadd.f32 %v1322_v1, %v1321_v62  ;;  %v1329_v4 = vadd.f32 %v1328_v2, %v1327_v5 }
0x1149   :  { %v1333_v28 = vsel %vm1332_vm6, %v1329_v4, %v1323_v3 }
0x114a   :  { %v1335_v20 = vadd.f32 %v1333_v28, %v4390_v49 }
0x114c   :  { %v1414_v30 = vadd.f32 %v1412_v29, %v1335_v20 }
0x114e   :  { %3908 = vtanh.f32 %v1414_v30  ;;  %v3320_v32 = vmul.f32 -1.442695, %v1414_v30 }
0x1150   :  { %3910 = vpow2.f32 %v3320_v32 }
0x115b   :  { %v3909_v31 = vpop.eup %3908 }
0x115c   :  { %1427 = vrot.lane.b32.xlu1 %v3909_v31, %s4094_s11  ;;  %v4709_v31 = vld [vmem:[%s5144_s7] ss:$0 sm:$0xff] }
0x115d   :  { %v3911_v40 = vpop.eup %3910 }
0x115e   :  { %v1418_v0 = vadd.f32 1.0, %v3911_v40 }
0x1160   :  { %3912 = vrcp.f32 %v1418_v0 }
0x116d   :  { %v3913_v9 = vpop.eup %3912 }
0x116e   :  { %v1425_v37 = vmul.f32 %v3913_v9, %v1423_v12 }
0x11ce   :  { %v1428_v33 = vpop.permute.xlu1 %1427 }
0x11cf   :  { %v1430_v34 = vmul.f32 %v3913_v9, %v1428_v33 }
0x11d1   :  { %1432 = vrot.lane.b32.xlu0 %v1430_v34, %s4095_s2 }
0x1243   :  { %v1433_v13 = vpop.permute.xlu0 %1432 }
0x1244   :  { %v4639_v38 = vadd.f32 %v1433_v13, %v1425_v37 }
0x1246   :  { %3914 = vtanh.f32 %v4639_v38 }
0x1253   :  { %v3915_v14 = vpop.eup %3914 }
0x1254   :  { %1438 = vrot.lane.b32.xlu1 %v3915_v14, %s4094_s11 }
0x1258   :  { %1447 = vrot.lane.b32.xlu1 %v1446_v39, %s4094_s11 }
0x12c6   :  { %v1439_v42 = vpop.permute.xlu1 %1438 }
0x12c7   :  { %v4645_v43 = vmul.f32 %v3913_v9, %v1439_v42  ;;  %v4721_v42 = vld [vmem:[%s5141_s4 + $0x18] sm:$0xff] }
0x12c9   :  { %1443 = vrot.lane.b32.xlu0 %v4645_v43, %s4095_s2  ;;  %v1732_v34 = vrot.slane %v4645_v43, 4  ;;  %v4730_v43 = vld [vmem:[%s5141_s4 + $0x10] sm:$0xff] }
0x12ca   :  { %v1448_v59 = vpop.permute.xlu1 %1447 }
0x133b   :  { %v1444_v45 = vpop.permute.xlu0 %1443 }
0x133c   :  { %v1450_v50 = vsel %vm64_vm0, %v1444_v45, %v1448_v59  ;;  %v4737_v59 = vld [vmem:[%s5141_s4 + $0x8] sm:$0xff]  ;;  %v4744_v45 = vld [vmem:[%s5141_s4] sm:$0xff] }
0x133d   :  { %v1452_v46 = vrot.slane %v1450_v50, 4 }
0x133f   :  { %3657 = vmatmul.mubr.msk.f32.vlgmr.msra.gmra.mxu1 %vm658_vm4, %v1452_v46 }
0x1340   :  { %3682 = vmatpush3.msra.mxu1 %v4406_v6  ;;  %3697 = vmatprep.mubr.msk.f32.mxu1 %vm4091_vm1, %v4090_v11 }
0x1341   :  { %3683 = vmatprep.subr.mxu1 %v4090_v11 }
0x1342   :  { %3684 = vmatpush3.msra.mxu1 %v4411_v7 }
0x1343   :  { %3685 = vmatprep.subr.mxu1 %v4090_v11 }
0x1344   :  { %3686 = vmatpush3.msra.mxu1 %v4418_v10 }
0x1345   :  { %3687 = vmatprep.subr.mxu1 %v4090_v11 }
0x1346   :  { %3688 = vmatpush3.msra.mxu1 %v4425_v16 }
0x1347   :  { %3689 = vmatprep.subr.mxu1 %v4090_v11 }
0x1348   :  { %3690 = vmatpush3.msra.mxu1 %v4432_v18 }
0x1349   :  { %3691 = vmatprep.subr.mxu1 %v4090_v11 }
0x134a   :  { %3692 = vmatpush3.msra.mxu1 %v4442_v19 }
0x134b   :  { %3693 = vmatprep.subr.mxu1 %v4090_v11 }
0x134c   :  { %3694 = vmatpush3.msra.mxu1 %v4447_v24 }
0x134d   :  { %3695 = vmatprep.subr.mxu1 %v4090_v11 }
0x134e   :  { %3696 = vmatpush3.msra.mxu1 %v4456_v25 }
0x134f   :  { %3722 = vmatprep.subr.mxu1 %v4090_v11 }
0x13ff   :  { %v1521_v6 = vpop.f32.mrf.mxu1 }
0x1400   :  { %v1522_v7 = vadd.f32 %v4486_v15, %v1521_v6 }
0x1401   :  { %v3658_v10 = vpop.f32.mrf.mxu1 }
0x1402   :  { %3916 = vtanh.f32 %v1522_v7  ;;  %v3322_v18 = vmul.f32 -1.442695, %v1522_v7 }
0x1404   :  { %3918 = vpow2.f32 %v3322_v18 }
0x140f   :  { %v3917_v16 = vpop.eup %3916 }
0x1410   :  { %1534 = vrot.lane.b32.xlu0 %v3917_v16, %s4094_s11 }
0x1411   :  { %v3919_v19 = vpop.eup %3918 }
0x1412   :  { %v1528_v47 = vadd.f32 1.0, %v3919_v19 }
0x1414   :  { %3920 = vrcp.f32 %v1528_v47 }
0x1421   :  { %v3921_v24 = vpop.eup %3920 }
0x1422   :  { %v1532_v52 = vmul.f32 %v3921_v24, %v4583_v41  ;;  %v3134_v41 = vsel %vm3133_vm7, %v4499_v57, %v3122_v61 }
0x1482   :  { %v1535_v48 = vpop.permute.xlu0 %1534 }
0x1483   :  { %v1537_v51 = vmul.f32 %v3921_v24, %v1535_v48 }
0x1485   :  { %1539 = vrot.lane.b32.xlu1 %v1537_v51, %s4095_s2 }
0x14f7   :  { %v1540_v17 = vpop.permute.xlu1 %1539 }
0x14f8   :  { %v4673_v58 = vadd.f32 %v1540_v17, %v1532_v52 }
0x14fa   :  { %3922 = vtanh.f32 %v4673_v58 }
0x1507   :  { %v3923_v60 = vpop.eup %3922 }
0x1508   :  { %1545 = vrot.lane.b32.xlu0 %v3923_v60, %s4094_s11 }
0x157a   :  { %v1546_v62 = vpop.permute.xlu0 %1545 }
0x157b   :  { %v4678_v5 = vmul.f32 %v3921_v24, %v1546_v62 }
0x157d   :  { %v3124_v1 = vrot.slane %v4678_v5, 4  ;;  %1550 = vrot.lane.b32.xlu1 %v4678_v5, %s4095_s2 }
0x157f   :  { %v4686_v2 = vsel %vm3135_vm8, %v3134_v41, %v3124_v1 }
0x15ef   :  { %v1551_v3 = vpop.permute.xlu1 %1550 }
0x15f0   :  { %3668 = vmatmul.mubr.msk.f32.vlgmr.msra.gmra.mxu0 %vm64_vm0, %v1551_v3 }
0x15f1   :  { %3671 = vmatpush3.msra.mxu0 %v4327_v53  ;;  %3678 = vmatprep.mubr.msk.f32.mxu0 %vm4091_vm1, %v4090_v11 }
0x15f2   :  { %3672 = vmatprep.subr.mxu0 %v4090_v11 }
0x15f3   :  { %3673 = vmatpush3.msra.mxu0 %v4334_v54 }
0x15f4   :  { %3674 = vmatprep.subr.mxu0 %v4090_v11 }
0x15f5   :  { %3675 = vmatpush3.msra.mxu0 %v4343_v55 }
0x15f6   :  { %3676 = vmatprep.subr.mxu0 %v4090_v11 }
0x15f7   :  { %3677 = vmatpush3.msra.mxu0 %v4350_v56 }
0x15f8   :  { %3700 = vmatprep.subr.mxu0 %v4090_v11 }
0x16b0   :  { %v1620_v57 = vpop.f32.mrf.mxu0 }
0x16b1   :  { %v1631_v53 = vrot.slane %v1620_v57, %v4275_v22 }
0x16b2   :  { %v3669_v44 = vpop.f32.mrf.mxu0 }
0x16b3   :  { %v1632_v4 = vcombine.high %v1631_v53, %v1631_v53  ;;  %v1639_v28 = vrot.slane %v1631_v53, %v4275_v22 }
0x16b5   :  { %v1646_v29 = vrot.slane %v1632_v4, %v4275_v22  ;;  %v1650_v54 = vrot.slane %v1639_v28, %v4281_v27 }
0x16b7   :  { %v1654_v20 = vrot.slane %v1646_v29, %v4281_v27  ;;  %v1657_v55 = vadd.f32 %v1650_v54, %v4289_v35 }
0x16b9   :  { %v1658_v30 = vadd.f32 %v1654_v20, %v4291_v36  ;;  %3924 = vtanh.f32 %v1657_v55 }
0x16bb   :  { %3926 = vtanh.f32 %v1658_v30 }
0x16c6   :  { %v3925_v56 = vpop.eup %3924 }
0x16c7   :  { %v1661_v32 = vmul.f32 %v4709_v31, %v3925_v56 }
0x16c8   :  { %v3927_v40 = vpop.eup %3926 }
0x16c9   :  { %v1663_v0 = vsel %vm64_vm0, %v1661_v32, 0.0  ;;  %v1662_v9 = vmul.f32 %v4709_v31, %v3927_v40 }
0x16ca   :  { %1664 = vadd.xlane.f32.xlu0 %v1663_v0 }
0x16cb   :  { %v1666_v33 = vsel %vm64_vm0, %v1662_v9, 0.0 }
0x16cc   :  { %1667 = vadd.xlane.f32.xlu1 %v1666_v33 }
0x16e0   :  { %1733 = vrot.lane.b32.xlu0 %v1732_v34, %s4095_s2 }
0x1753   :  { %v1665_v12 = vpop.xlane.xlu0 %1664 }
0x1754   :  { %v1669_v37 = vmul.f32 1.442695, %v1665_v12 }
0x1755   :  { %v1668_v13 = vpop.xlane.xlu1 %1667 }
0x1756   :  { %3928 = vpow2.f32 %v1669_v37  ;;  %v1671_v14 = vmul.f32 1.442695, %v1668_v13 }
0x1757   :  { %v1734_v39 = vpop.permute.xlu0 %1733 }
0x1758   :  { %3930 = vpow2.f32 %v1671_v14  ;;  %3679 = vmatmul.mubr.msk.f32.vlgmr.msra.gmra.mxu0 %vm64_vm0, %v1734_v39  ;;  %v1819_v39 = vrot.slane %v4639_v38, 6 }
0x1759   :  { %3701 = vmatpush3.msra.mxu0 %v4721_v42  ;;  %3708 = vmatprep.mubr.msk.f32.mxu0 %vm4091_vm1, %v4090_v11 }
0x175a   :  { %3702 = vmatprep.subr.mxu0 %v4090_v11 }
0x175b   :  { %3703 = vmatpush3.msra.mxu0 %v4730_v43 }
0x175c   :  { %3704 = vmatprep.subr.mxu0 %v4090_v11 }
0x175d   :  { %3705 = vmatpush3.msra.mxu0 %v4737_v59 }
0x175e   :  { %3706 = vmatprep.subr.mxu0 %v4090_v11 }
0x175f   :  { %3707 = vmatpush3.msra.mxu0 %v4744_v45 }
0x1760   :  { %3711 = vmatprep.subr.mxu0 %v4090_v11 }
0x1763   :  { %v3929_v50 = vpop.eup %3928 }
0x1764   :  { %v1678_v6 = vrot.slane %v3929_v50, %v4372_v63 }
0x1765   :  { %v3931_v46 = vpop.eup %3930 }
0x1766   :  { %v1682_v7 = vrot.slane %v3931_v46, %v4372_v63 }
0x1768   :  { %v1683_v10 = vsel %vm498_vm2, %v1682_v7, %v1678_v6  ;;  %v1842_v7 = vrot.slane %v4678_v5, 2  ;;  %v4784_v5 = vld [vmem:[%s5149_s12 + $0x30] sm:$0xff] }
0x1769   :  { %v1685_v16 = vsel %vm501_vm3, %v1683_v10, 0.0 }
0x176a   :  { %1686 = vadd.xlane.f32.xlu1 %v1685_v16 }
0x17f3   :  { %v1687_v18 = vpop.xlane.xlu1 %1686 }
0x17f4   :  { %3932 = vrcp.f32 %v1687_v18 }
0x1801   :  { %v3933_v19 = vpop.eup %3932 }
0x1802   :  { %v1697_v47 = vrot.slane %v3933_v19, %v4379_v8  ;;  %v1693_v24 = vrot.slane %v3933_v19, %v4281_v27 }
0x1804   :  { %v1701_v48 = vmul.f32 %v3931_v46, %v1697_v47  ;;  %v1700_v51 = vmul.f32 %v3929_v50, %v1693_v24  ;;  %v4775_v24 = vld [vmem:[%s5149_s12 + $0x38] sm:$0xff] }
0x1806   :  { %1709 = vperm.xlu0 %3845, %v1701_v48   ;;  %1704 = vperm.xlu1 %3844, %v1700_v51   ;;  %v4791_v48 = vld [vmem:[%s5149_s12 + $0x28] sm:$0xff]  ;;  %v4798_v51 = vld [vmem:[%s5149_s12 + $0x20] sm:$0xff] }
0x1818   :  { %v1803_v52 = vpop.f32.mrf.mxu0 }
0x1819   :  { %v1808_v32 = vrot.slane %v1803_v52, 2  ;;  %v4805_v52 = vld [vmem:[%s5149_s12 + $0x18] sm:$0xff] }
0x181a   :  { %v3680_v17 = vpop.f32.mrf.mxu0 }
0x181b   :  { %v4812_v17 = vld [vmem:[%s5149_s12 + $0x10] sm:$0xff] }
0x1881   :  { %v1710_v60 = vpop.permute.xlu0 %1709  ;;  %v1705_v61 = vpop.permute.xlu1 %1704 }
0x1882   :  { %v1713_v62 = vmul.f32 %v4272_v21, %v1710_v60  ;;  %v1712_v1 = vmul.f32 %v1705_v61, %v4277_v23  ;;  %v4819_v60 = vld [vmem:[%s5149_s12 + $0x8] sm:$0xff] }
0x1884   :  { %v1720_v41 = vrot.slane %v1713_v62, 4  ;;  %v1714_v3 = vrot.slane %v1712_v1, 4 }
0x1886   :  { %v1721_v57 = vadd.f32 %v1720_v41, %v1713_v62  ;;  %v1715_v53 = vadd.f32 %v1714_v3, %v1712_v1 }
0x1888   :  { %v1722_v44 = vrot.slane %v1721_v57, 2  ;;  %v1716_v4 = vrot.slane %v1715_v53, 2 }
0x188a   :  { %v1723_v28 = vadd.f32 %v1722_v44, %v1721_v57  ;;  %v1717_v29 = vadd.f32 %v1716_v4, %v1715_v53 }
0x188c   :  { %v1724_v54 = vrot.slane %v1723_v28, 1  ;;  %v1718_v20 = vrot.slane %v1717_v29, 1 }
0x188e   :  { %v1725_v55 = vadd.f32 %v1724_v54, %v1723_v28  ;;  %v1719_v30 = vadd.f32 %v1718_v20, %v1717_v29 }
0x1890   :  { %v1729_v56 = vsel %vm1728_vm9, %v1725_v55, %v1719_v30 }
0x1891   :  { %v1731_v40 = vadd.f32 %v1729_v56, %v4390_v49  ;;  %v4850_v56 = vld [vmem:[%s5147_s10 + $0x10] sm:$0xff] }
0x1893   :  { %v1810_v0 = vadd.f32 %v1808_v32, %v1731_v40  ;;  %v4857_v32 = vld [vmem:[%s5147_s10 + $0x8] sm:$0xff]  ;;  %v4864_v40 = vld [vmem:[%s5147_s10] sm:$0xff] }
0x1895   :  { %3934 = vtanh.f32 %v1810_v0  ;;  %v3325_v33 = vmul.f32 -1.442695, %v1810_v0 }
0x1897   :  { %3936 = vpow2.f32 %v3325_v33 }
0x18a2   :  { %v3935_v9 = vpop.eup %3934 }
0x18a3   :  { %1823 = vrot.lane.b32.xlu0 %v3935_v9, %s4094_s11 }
0x18a4   :  { %v3937_v34 = vpop.eup %3936 }
0x18a5   :  { %v1814_v12 = vadd.f32 1.0, %v3937_v34 }
0x18a7   :  { %3938 = vrcp.f32 %v1814_v12 }
0x18b4   :  { %v3939_v37 = vpop.eup %3938 }
0x18b5   :  { %v1821_v50 = vmul.f32 %v3939_v37, %v1819_v39 }
0x1915   :  { %v1824_v13 = vpop.permute.xlu0 %1823 }
0x1916   :  { %v1826_v14 = vmul.f32 %v3939_v37, %v1824_v13 }
0x1918   :  { %1828 = vrot.lane.b32.xlu1 %v1826_v14, %s4095_s2 }
0x198a   :  { %v1829_v46 = vpop.permute.xlu1 %1828 }
0x198b   :  { %v4760_v49 = vadd.f32 %v1829_v46, %v1821_v50 }
0x198d   :  { %3940 = vtanh.f32 %v4760_v49 }
0x199a   :  { %v3941_v6 = vpop.eup %3940 }
0x199b   :  { %1834 = vrot.lane.b32.xlu0 %v3941_v6, %s4094_s11 }
0x199f   :  { %1843 = vrot.lane.b32.xlu0 %v1842_v7, %s4094_s11 }
0x1a0d   :  { %v1835_v10 = vpop.permute.xlu0 %1834 }
0x1a0e   :  { %v4766_v16 = vmul.f32 %v3939_v37, %v1835_v10 }
0x1a10   :  { %1839 = vrot.lane.b32.xlu1 %v4766_v16, %s4095_s2 }
0x1a11   :  { %v1844_v38 = vpop.permute.xlu0 %1843 }
0x1a82   :  { %v1840_v18 = vpop.permute.xlu1 %1839 }
0x1a83   :  { %v1846_v19 = vsel %vm64_vm0, %v1840_v18, %v1844_v38 }
0x1a84   :  { %v1848_v47 = vrot.slane %v1846_v19, 6  ;;  %v2127_v19 = vrot.slane %v4766_v16, 6 }
0x1a86   :  { %3698 = vmatmul.mubr.msk.f32.vlgmr.msra.gmra.mxu1 %vm658_vm4, %v1848_v47 }
0x1a87   :  { %3723 = vmatpush3.msra.mxu1 %v4775_v24  ;;  %3738 = vmatprep.mubr.msk.f32.mxu1 %vm4091_vm1, %v4090_v11 }
0x1a88   :  { %3724 = vmatprep.subr.mxu1 %v4090_v11 }
0x1a89   :  { %3725 = vmatpush3.msra.mxu1 %v4784_v5 }
0x1a8a   :  { %3726 = vmatprep.subr.mxu1 %v4090_v11 }
0x1a8b   :  { %3727 = vmatpush3.msra.mxu1 %v4791_v48 }
0x1a8c   :  { %3728 = vmatprep.subr.mxu1 %v4090_v11 }
0x1a8d   :  { %3729 = vmatpush3.msra.mxu1 %v4798_v51 }
0x1a8e   :  { %3730 = vmatprep.subr.mxu1 %v4090_v11 }
0x1a8f   :  { %3731 = vmatpush3.msra.mxu1 %v4805_v52 }
0x1a90   :  { %3732 = vmatprep.subr.mxu1 %v4090_v11 }
0x1a91   :  { %3733 = vmatpush3.msra.mxu1 %v4812_v17 }
0x1a92   :  { %3734 = vmatprep.subr.mxu1 %v4090_v11 }
0x1a93   :  { %3735 = vmatpush3.msra.mxu1 %v4819_v60 }
0x1a94   :  { %3736 = vmatprep.subr.mxu1 %v4090_v11 }
0x1a95   :  { %3737 = vmatpush3.msra.mxu1 %v4456_v25 }
0x1a96   :  { %3763 = vmatprep.subr.mxu1 %v4090_v11 }
0x1b46   :  { %v1917_v61 = vpop.f32.mrf.mxu1 }
0x1b47   :  { %v1918_v62 = vadd.f32 %v4486_v15, %v1917_v61 }
0x1b48   :  { %v3699_v1 = vpop.f32.mrf.mxu1 }
0x1b49   :  { %3942 = vtanh.f32 %v1918_v62  ;;  %v3327_v3 = vmul.f32 -1.442695, %v1918_v62 }
0x1b4b   :  { %3944 = vpow2.f32 %v3327_v3 }
0x1b56   :  { %v3943_v41 = vpop.eup %3942 }
0x1b57   :  { %1930 = vrot.lane.b32.xlu1 %v3943_v41, %s4094_s11 }
0x1b58   :  { %v3945_v57 = vpop.eup %3944 }
0x1b59   :  { %v1924_v53 = vadd.f32 1.0, %v3945_v57 }
0x1b5b   :  { %3946 = vrcp.f32 %v1924_v53 }
0x1b68   :  { %v3947_v44 = vpop.eup %3946 }
0x1b69   :  { %v1928_v25 = vmul.f32 %v3947_v44, %v4673_v58  ;;  %v4841_v58 = vld [vmem:[%s5147_s10 + $0x18] sm:$0xff] }
0x1bc9   :  { %v1931_v4 = vpop.permute.xlu1 %1930 }
0x1bca   :  { %v1933_v28 = vmul.f32 %v3947_v44, %v1931_v4 }
0x1bcc   :  { %1935 = vrot.lane.b32.xlu0 %v1933_v28, %s4095_s2 }
0x1c3e   :  { %v1936_v29 = vpop.permute.xlu0 %1935 }
0x1c3f   :  { %v4829_v54 = vadd.f32 %v1936_v29, %v1928_v25 }
0x1c41   :  { %3948 = vtanh.f32 %v4829_v54 }
0x1c4e   :  { %v3949_v15 = vpop.eup %3948 }
0x1c4f   :  { %1941 = vrot.lane.b32.xlu1 %v3949_v15, %s4094_s11 }
0x1cc1   :  { %v1942_v20 = vpop.permute.xlu1 %1941 }
0x1cc2   :  { %v4833_v55 = vmul.f32 %v3947_v44, %v1942_v20 }
0x1cc4   :  { %1946 = vrot.lane.b32.xlu0 %v4833_v55, %s4095_s2 }
0x1d36   :  { %v1947_v30 = vpop.permute.xlu0 %1946 }
0x1d37   :  { %3709 = vmatmul.mubr.msk.f32.vlgmr.msra.gmra.mxu0 %vm64_vm0, %v1947_v30 }
0x1d38   :  { %3712 = vmatpush3.msra.mxu0 %v4841_v58  ;;  %3719 = vmatprep.mubr.msk.f32.mxu0 %vm4091_vm1, %v4090_v11 }
0x1d39   :  { %3713 = vmatprep.subr.mxu0 %v4090_v11 }
0x1d3a   :  { %3714 = vmatpush3.msra.mxu0 %v4850_v56 }
0x1d3b   :  { %3715 = vmatprep.subr.mxu0 %v4090_v11 }
0x1d3c   :  { %3716 = vmatpush3.msra.mxu0 %v4857_v32 }
0x1d3d   :  { %3717 = vmatprep.subr.mxu0 %v4090_v11 }
0x1d3e   :  { %3718 = vmatpush3.msra.mxu0 %v4864_v40 }
0x1d3f   :  { %3741 = vmatprep.subr.mxu0 %v4090_v11 }
0x1df7   :  { %v2016_v0 = vpop.f32.mrf.mxu0 }
0x1df8   :  { %v2027_v9 = vrot.slane %v2016_v0, %v4275_v22 }
0x1df9   :  { %v3710_v33 = vpop.f32.mrf.mxu0 }
0x1dfa   :  { %v2028_v34 = vcombine.high %v2027_v9, %v2027_v9  ;;  %v2035_v12 = vrot.slane %v2027_v9, %v4275_v22 }
0x1dfc   :  { %v2042_v37 = vrot.slane %v2028_v34, %v4275_v22  ;;  %v2046_v13 = vrot.slane %v2035_v12, %v4281_v27 }
0x1dfe   :  { %v2050_v14 = vrot.slane %v2042_v37, %v4281_v27  ;;  %v2053_v39 = vadd.f32 %v2046_v13, %v4289_v35 }
0x1e00   :  { %v2054_v50 = vadd.f32 %v2050_v14, %v4291_v36  ;;  %3950 = vtanh.f32 %v2053_v39 }
0x1e02   :  { %3952 = vtanh.f32 %v2054_v50 }
0x1e0d   :  { %v3951_v46 = vpop.eup %3950 }
0x1e0e   :  { %v2057_v6 = vmul.f32 %v4709_v31, %v3951_v46 }
0x1e0f   :  { %v3953_v7 = vpop.eup %3952 }
0x1e10   :  { %v2059_v10 = vsel %vm64_vm0, %v2057_v6, 0.0  ;;  %v2058_v38 = vmul.f32 %v4709_v31, %v3953_v7 }
0x1e11   :  { %2060 = vadd.xlane.f32.xlu1 %v2059_v10 }
0x1e12   :  { %v2062_v18 = vsel %vm64_vm0, %v2058_v38, 0.0 }
0x1e13   :  { %2063 = vadd.xlane.f32.xlu0 %v2062_v18 }
0x1e29   :  { %2128 = vrot.lane.b32.xlu0 %v2127_v19, %s4095_s2 }
0x1e9a   :  { %v2061_v47 = vpop.xlane.xlu1 %2060 }
0x1e9b   :  { %v2065_v61 = vmul.f32 1.442695, %v2061_v47 }
0x1e9c   :  { %v2064_v62 = vpop.xlane.xlu0 %2063 }
0x1e9d   :  { %3954 = vpow2.f32 %v2065_v61  ;;  %v2067_v1 = vmul.f32 1.442695, %v2064_v62 }
0x1e9f   :  { %3956 = vpow2.f32 %v2067_v1 }
0x1ea0   :  { %v2129_v41 = vpop.permute.xlu0 %2128 }
0x1ea1   :  { %3720 = vmatmul.mubr.msk.f32.vlgmr.msra.gmra.mxu0 %vm64_vm0, %v2129_v41 }
0x1ea2   :  { %3742 = vmatpush3.msra.mxu0 %v4721_v42  ;;  %3749 = vmatprep.mubr.msk.f32.mxu0 %vm4091_vm1, %v4090_v11 }
0x1ea3   :  { %3743 = vmatprep.subr.mxu0 %v4090_v11 }
0x1ea4   :  { %3744 = vmatpush3.msra.mxu0 %v4730_v43 }
0x1ea5   :  { %3745 = vmatprep.subr.mxu0 %v4090_v11 }
0x1ea6   :  { %3746 = vmatpush3.msra.mxu0 %v4737_v59 }
0x1ea7   :  { %3747 = vmatprep.subr.mxu0 %v4090_v11 }
0x1ea8   :  { %3748 = vmatpush3.msra.mxu0 %v4744_v45 }
0x1ea9   :  { %3752 = vmatprep.subr.mxu0 %v4090_v11 }
0x1eaa   :  { %v3955_v16 = vpop.eup %3954 }
0x1eab   :  { %v2074_v57 = vrot.slane %v3955_v16, %v4372_v63 }
0x1eac   :  { %v3957_v3 = vpop.eup %3956 }
0x1ead   :  { %v2078_v53 = vrot.slane %v3957_v3, %v4372_v63 }
0x1eaf   :  { %v2079_v44 = vsel %vm498_vm2, %v2078_v53, %v2074_v57 }
0x1eb0   :  { %v2081_v4 = vsel %vm501_vm3, %v2079_v44, 0.0 }
0x1eb1   :  { %2082 = vadd.xlane.f32.xlu1 %v2081_v4 }
0x1f3a   :  { %v2083_v28 = vpop.xlane.xlu1 %2082 }
0x1f3b   :  { %3958 = vrcp.f32 %v2083_v28  ;;  %v2211_v28 = vrot.slane %v4760_v49, 6 }
0x1f48   :  { %v3959_v25 = vpop.eup %3958 }
0x1f49   :  { %v2093_v29 = vrot.slane %v3959_v25, %v4379_v8  ;;  %v2089_v15 = vrot.slane %v3959_v25, %v4281_v27 }
0x1f4b   :  { %v2097_v20 = vmul.f32 %v3957_v3, %v2093_v29  ;;  %v2096_v30 = vmul.f32 %v3955_v16, %v2089_v15 }
0x1f4d   :  { %2105 = vperm.xlu0 %3845, %v2097_v20   ;;  %2100 = vperm.xlu1 %3844, %v2096_v30  }
0x1f61   :  { %v2198_v0 = vpop.f32.mrf.mxu0 }
0x1f63   :  { %v3721_v9 = vpop.f32.mrf.mxu0 }
0x1fc8   :  { %v2101_v33 = vpop.permute.xlu1 %2100  ;;  %v2106_v34 = vpop.permute.xlu0 %2105 }
0x1fc9   :  { %v2108_v12 = vmul.f32 %v2101_v33, %v4277_v23  ;;  %v2109_v37 = vmul.f32 %v4272_v21, %v2106_v34  ;;  %v4933_v34 = vld [vmem:[%s5149_s12] sm:$0xff] }
0x1fcb   :  { %v2110_v13 = vrot.slane %v2108_v12, 4  ;;  %v2116_v14 = vrot.slane %v2109_v37, 4 }
0x1fcd   :  { %v2111_v39 = vadd.f32 %v2110_v13, %v2108_v12  ;;  %v2117_v50 = vadd.f32 %v2116_v14, %v2109_v37  ;;  %v4940_v37 = vld [vmem:[%s5150_s13] ss:$0 sm:$0xff] }
0x1fcf   :  { %v2112_v46 = vrot.slane %v2111_v39, 2  ;;  %v2118_v6 = vrot.slane %v2117_v50, 2 }
0x1fd1   :  { %v2113_v7 = vadd.f32 %v2112_v46, %v2111_v39  ;;  %v2119_v10 = vadd.f32 %v2118_v6, %v2117_v50 }
0x1fd3   :  { %v2114_v38 = vrot.slane %v2113_v7, 1  ;;  %v2120_v18 = vrot.slane %v2119_v10, 1 }
0x1fd5   :  { %v2115_v19 = vadd.f32 %v2114_v38, %v2113_v7  ;;  %v2121_v47 = vadd.f32 %v2120_v18, %v2119_v10 }
0x1fd7   :  { %v2124_v61 = vsel %vm498_vm2, %v2121_v47, %v2115_v19 }
0x1fd8   :  { %v2126_v62 = vadd.f32 %v2124_v61, %v4386_v26 }
0x1fda   :  { %v2202_v1 = vadd.f32 %v2198_v0, %v2126_v62 }
0x1fdc   :  { %3960 = vtanh.f32 %v2202_v1  ;;  %v3330_v16 = vmul.f32 -1.442695, %v2202_v1 }
0x1fde   :  { %3962 = vpow2.f32 %v3330_v16 }
0x1fe9   :  { %v3961_v41 = vpop.eup %3960 }
0x1fea   :  { %2215 = vrot.lane.b32.xlu1 %v3961_v41, %s4094_s11 }
0x1feb   :  { %v3963_v3 = vpop.eup %3962 }
0x1fec   :  { %v2206_v57 = vadd.f32 1.0, %v3963_v3 }
0x1fee   :  { %3964 = vrcp.f32 %v2206_v57 }
0x1ffb   :  { %v3965_v53 = vpop.eup %3964 }
0x1ffc   :  { %v2213_v25 = vmul.f32 %v3965_v53, %v2211_v28 }
0x205c   :  { %v2216_v44 = vpop.permute.xlu1 %2215 }
0x205d   :  { %v2218_v4 = vmul.f32 %v3965_v53, %v2216_v44 }
0x205f   :  { %2220 = vrot.lane.b32.xlu0 %v2218_v4, %s4095_s2 }
0x20d1   :  { %v2221_v29 = vpop.permute.xlu0 %2220 }
0x20d2   :  { %v4905_v15 = vadd.f32 %v2221_v29, %v2213_v25 }
0x20d4   :  { %3966 = vtanh.f32 %v4905_v15 }
0x20e1   :  { %v3967_v20 = vpop.eup %3966 }
0x20e2   :  { %2226 = vrot.lane.b32.xlu1 %v3967_v20, %s4094_s11 }
0x20e6   :  { %2234 = vrot.lane.b32.xlu1 %v4833_v55, %s4094_s11 }
0x2154   :  { %v2227_v30 = vpop.permute.xlu1 %2226 }
0x2155   :  { %v2229_v0 = vmul.f32 %v3965_v53, %v2227_v30 }
0x2157   :  { %2231 = vrot.lane.b32.xlu0 %v2229_v0, %s4095_s2 }
0x2158   :  { %v2235_v9 = vpop.permute.xlu1 %2234 }
0x21c9   :  { %v2232_v33 = vpop.permute.xlu0 %2231 }
0x21ca   :  { %v2237_v49 = vsel %vm64_vm0, %v2232_v33, %v2235_v9 }
0x21cb   :  { %3739 = vmatmul.mubr.msk.f32.vlgmr.msra.gmra.mxu1 %vm658_vm4, %v2237_v49 }
0x21cc   :  { %3764 = vmatpush3.msra.mxu1 %v4775_v24  ;;  %3779 = vmatprep.mubr.msk.f32.mxu1 %vm4091_vm1, %v4090_v11 }
0x21cd   :  { %3765 = vmatprep.subr.mxu1 %v4090_v11 }
0x21ce   :  { %3766 = vmatpush3.msra.mxu1 %v4784_v5 }
0x21cf   :  { %3767 = vmatprep.subr.mxu1 %v4090_v11 }
0x21d0   :  { %3768 = vmatpush3.msra.mxu1 %v4791_v48 }
0x21d1   :  { %3769 = vmatprep.subr.mxu1 %v4090_v11 }
0x21d2   :  { %3770 = vmatpush3.msra.mxu1 %v4798_v51 }
0x21d3   :  { %3771 = vmatprep.subr.mxu1 %v4090_v11 }
0x21d4   :  { %3772 = vmatpush3.msra.mxu1 %v4805_v52 }
0x21d5   :  { %3773 = vmatprep.subr.mxu1 %v4090_v11 }
0x21d6   :  { %3774 = vmatpush3.msra.mxu1 %v4812_v17 }
0x21d7   :  { %3775 = vmatprep.subr.mxu1 %v4090_v11 }
0x21d8   :  { %3776 = vmatpush3.msra.mxu1 %v4819_v60 }
0x21d9   :  { %3777 = vmatprep.subr.mxu1 %v4090_v11 }
0x21da   :  { %3778 = vmatpush3.msra.mxu1 %v4933_v34 }
0x21db   :  { %3804 = vmatprep.subr.mxu1 %v4090_v11 }
0x228b   :  { %v2307_v12 = vpop.f32.mrf.mxu1 }
0x228c   :  { %v2308_v13 = vadd.f32 %v4940_v37, %v2307_v12 }
0x228d   :  { %v3740_v14 = vpop.f32.mrf.mxu1 }
0x228e   :  { %3968 = vtanh.f32 %v2308_v13  ;;  %v3332_v50 = vmul.f32 -1.442695, %v2308_v13 }
0x2290   :  { %3970 = vpow2.f32 %v3332_v50 }
0x229b   :  { %v3969_v39 = vpop.eup %3968 }
0x229c   :  { %2320 = vrot.lane.b32.xlu0 %v3969_v39, %s4094_s11 }
0x229d   :  { %v3971_v46 = vpop.eup %3970 }
0x229e   :  { %v2314_v6 = vadd.f32 1.0, %v3971_v46 }
0x22a0   :  { %3972 = vrcp.f32 %v2314_v6 }
0x22ad   :  { %v3973_v7 = vpop.eup %3972 }
0x22ae   :  { %v2318_v18 = vmul.f32 %v3973_v7, %v4829_v54 }
0x230e   :  { %v2321_v10 = vpop.permute.xlu0 %2320 }
0x230f   :  { %v2323_v38 = vmul.f32 %v3973_v7, %v2321_v10 }
0x2311   :  { %2325 = vrot.lane.b32.xlu1 %v2323_v38, %s4095_s2 }
0x2383   :  { %v2326_v19 = vpop.permute.xlu1 %2325 }
0x2384   :  { %v4946_v47 = vadd.f32 %v2326_v19, %v2318_v18 }
0x2386   :  { %3974 = vtanh.f32 %v4946_v47 }
0x2393   :  { %v3975_v61 = vpop.eup %3974 }
0x2394   :  { %2331 = vrot.lane.b32.xlu0 %v3975_v61, %s4094_s11 }
0x2406   :  { %v2332_v62 = vpop.permute.xlu0 %2331 }
0x2407   :  { %v4950_v1 = vmul.f32 %v3973_v7, %v2332_v62 }
0x2409   :  { %2336 = vrot.lane.b32.xlu1 %v4950_v1, %s4095_s2 }
0x247b   :  { %v2337_v41 = vpop.permute.xlu1 %2336 }
0x247c   :  { %3750 = vmatmul.mubr.msk.f32.vlgmr.msra.gmra.mxu0 %vm64_vm0, %v2337_v41 }
0x247d   :  { %3753 = vmatpush3.msra.mxu0 %v4841_v58  ;;  %3760 = vmatprep.mubr.msk.f32.mxu0 %vm4091_vm1, %v4090_v11 }
0x247e   :  { %3754 = vmatprep.subr.mxu0 %v4090_v11 }
0x247f   :  { %3755 = vmatpush3.msra.mxu0 %v4850_v56 }
0x2480   :  { %3756 = vmatprep.subr.mxu0 %v4090_v11 }
0x2481   :  { %3757 = vmatpush3.msra.mxu0 %v4857_v32 }
0x2482   :  { %3758 = vmatprep.subr.mxu0 %v4090_v11 }
0x2483   :  { %3759 = vmatpush3.msra.mxu0 %v4864_v40 }
0x2484   :  { %3761 = vmatmul.mubr.msk.f32.vlgmr.msra.gmra.mxu0 %vm64_vm0, %v2232_v33  ;;  %3782 = vmatprep.subr.mxu0 %v4090_v11 }
0x2485   :  { %3783 = vmatpush3.msra.mxu0 %v4721_v42  ;;  %3790 = vmatprep.mubr.msk.f32.mxu0 %vm4091_vm1, %v4090_v11 }
0x2486   :  { %3784 = vmatprep.subr.mxu0 %v4090_v11 }
0x2487   :  { %3785 = vmatpush3.msra.mxu0 %v4730_v43 }
0x2488   :  { %3786 = vmatprep.subr.mxu0 %v4090_v11 }
0x2489   :  { %3787 = vmatpush3.msra.mxu0 %v4737_v59 }
0x248a   :  { %3788 = vmatprep.subr.mxu0 %v4090_v11 }
0x248b   :  { %3789 = vmatpush3.msra.mxu0 %v4744_v45 }
0x248c   :  { %3793 = vmatprep.subr.mxu0 %v4090_v11 }
0x253c   :  { %v2406_v54 = vpop.f32.mrf.mxu0 }
0x253d   :  { %v2417_v42 = vrot.slane %v2406_v54, %v4275_v22 }
0x253e   :  { %v3751_v16 = vpop.f32.mrf.mxu0 }
0x253f   :  { %v2418_v3 = vcombine.high %v2417_v42, %v2417_v42  ;;  %v2425_v57 = vrot.slane %v2417_v42, %v4275_v22 }
0x2541   :  { %v2432_v53 = vrot.slane %v2418_v3, %v4275_v22  ;;  %v2436_v43 = vrot.slane %v2425_v57, %v4281_v27 }
0x2543   :  { %v2440_v44 = vrot.slane %v2432_v53, %v4281_v27  ;;  %v2443_v59 = vadd.f32 %v2436_v43, %v4289_v35 }
0x2544   :  { %v2585_v4 = vpop.f32.mrf.mxu0 }
0x2545   :  { %v2444_v45 = vadd.f32 %v2440_v44, %v4291_v36  ;;  %3976 = vtanh.f32 %v2443_v59 }
0x2546   :  { %v3762_v28 = vpop.f32.mrf.mxu0 }
0x2547   :  { %3978 = vtanh.f32 %v2444_v45 }
0x2552   :  { %v3977_v25 = vpop.eup %3976 }
0x2553   :  { %v2447_v29 = vmul.f32 %v4709_v31, %v3977_v25 }
0x2554   :  { %v3979_v20 = vpop.eup %3978 }
0x2555   :  { %v2449_v30 = vsel %vm64_vm0, %v2447_v29, 0.0  ;;  %v2448_v0 = vmul.f32 %v4709_v31, %v3979_v20 }
0x2556   :  { %2450 = vadd.xlane.f32.xlu0 %v2449_v30 }
0x2557   :  { %v2452_v9 = vsel %vm64_vm0, %v2448_v0, 0.0 }
0x2558   :  { %2453 = vadd.xlane.f32.xlu1 %v2452_v9  ;;  %v2590_v9 = vrot.slane %v2585_v4, 6 }
0x25df   :  { %v2451_v33 = vpop.xlane.xlu0 %2450 }
0x25e0   :  { %v2455_v49 = vmul.f32 1.442695, %v2451_v33 }
0x25e1   :  { %v2454_v12 = vpop.xlane.xlu1 %2453 }
0x25e2   :  { %3980 = vpow2.f32 %v2455_v49  ;;  %v2457_v13 = vmul.f32 1.442695, %v2454_v12 }
0x25e4   :  { %3982 = vpow2.f32 %v2457_v13 }
0x25ef   :  { %v3981_v14 = vpop.eup %3980 }
0x25f0   :  { %v2464_v50 = vrot.slane %v3981_v14, %v4372_v63 }
0x25f1   :  { %v3983_v39 = vpop.eup %3982 }
0x25f2   :  { %v2468_v46 = vrot.slane %v3983_v39, %v4372_v63 }
0x25f4   :  { %v2469_v6 = vsel %vm498_vm2, %v2468_v46, %v2464_v50 }
0x25f5   :  { %v2471_v7 = vsel %vm501_vm3, %v2469_v6, 0.0 }
0x25f6   :  { %2472 = vadd.xlane.f32.xlu0 %v2471_v7  ;;  %v2601_v7 = vrot.slane %v4905_v15, 6 }
0x267f   :  { %v2473_v10 = vpop.xlane.xlu0 %2472 }
0x2680   :  { %3984 = vrcp.f32 %v2473_v10 }
0x268d   :  { %v3985_v38 = vpop.eup %3984 }
0x268e   :  { %v2483_v18 = vrot.slane %v3985_v38, %v4379_v8  ;;  %v2479_v19 = vrot.slane %v3985_v38, %v4281_v27 }
0x2690   :  { %v2487_v61 = vmul.f32 %v3983_v39, %v2483_v18  ;;  %v2486_v62 = vmul.f32 %v3981_v14, %v2479_v19  ;;  %v2624_v19 = vrot.slane %v4950_v1, 6 }
0x2692   :  { %2495 = vperm.xlu1 %3844, %v2487_v61   ;;  %2490 = vperm.xlu0 %3845, %v2486_v62  }
0x270d   :  { %v2496_v41 = vpop.permute.xlu1 %2495  ;;  %v2491_v54 = vpop.permute.xlu0 %2490 }
0x270e   :  { %v2499_v42 = vmul.f32 %v4272_v21, %v2496_v41  ;;  %v2498_v16 = vmul.f32 %v2491_v54, %v4277_v23 }
0x2710   :  { %v2506_v3 = vrot.slane %v2499_v42, 4  ;;  %v2500_v57 = vrot.slane %v2498_v16, 4 }
0x2712   :  { %v2507_v53 = vadd.f32 %v2506_v3, %v2499_v42  ;;  %v2501_v43 = vadd.f32 %v2500_v57, %v2498_v16 }
0x2714   :  { %v2508_v44 = vrot.slane %v2507_v53, 2  ;;  %v2502_v59 = vrot.slane %v2501_v43, 2 }
0x2716   :  { %v2509_v45 = vadd.f32 %v2508_v44, %v2507_v53  ;;  %v2503_v28 = vadd.f32 %v2502_v59, %v2501_v43 }
0x2718   :  { %v2510_v25 = vrot.slane %v2509_v45, 1  ;;  %v2504_v29 = vrot.slane %v2503_v28, 1 }
0x271a   :  { %v2511_v20 = vadd.f32 %v2510_v25, %v2509_v45  ;;  %v2505_v30 = vadd.f32 %v2504_v29, %v2503_v28 }
0x271c   :  { %v2514_v0 = vsel %vm939_vm5, %v2511_v20, %v2505_v30 }
0x271d   :  { %v2516_v33 = vadd.f32 %v2514_v0, %v4386_v26 }
0x271f   :  { %v2592_v49 = vadd.f32 %v2590_v9, %v2516_v33 }
0x2721   :  { %3986 = vtanh.f32 %v2592_v49  ;;  %v3335_v13 = vmul.f32 -1.442695, %v2592_v49 }
0x2723   :  { %3988 = vpow2.f32 %v3335_v13 }
0x272e   :  { %v3987_v12 = vpop.eup %3986 }
0x272f   :  { %2605 = vrot.lane.b32.xlu1 %v3987_v12, %s4094_s11 }
0x2730   :  { %v3989_v14 = vpop.eup %3988 }
0x2731   :  { %v2596_v39 = vadd.f32 1.0, %v3989_v14 }
0x2733   :  { %3990 = vrcp.f32 %v2596_v39 }
0x2740   :  { %v3991_v50 = vpop.eup %3990 }
0x2741   :  { %v2603_v4 = vmul.f32 %v3991_v50, %v2601_v7 }
0x27a1   :  { %v2606_v46 = vpop.permute.xlu1 %2605 }
0x27a2   :  { %v2608_v6 = vmul.f32 %v3991_v50, %v2606_v46 }
0x27a4   :  { %2610 = vrot.lane.b32.xlu0 %v2608_v6, %s4095_s2 }
0x2816   :  { %v2611_v10 = vpop.permute.xlu0 %2610 }
0x2817   :  { %v5000_v38 = vadd.f32 %v2611_v10, %v2603_v4 }
0x2819   :  { %3992 = vtanh.f32 %v5000_v38 }
0x2826   :  { %v3993_v18 = vpop.eup %3992 }
0x2827   :  { %2616 = vrot.lane.b32.xlu1 %v3993_v18, %s4094_s11 }
0x282b   :  { %2625 = vrot.lane.b32.xlu1 %v2624_v19, %s4094_s11 }
0x2899   :  { %v2617_v61 = vpop.permute.xlu1 %2616 }
0x289a   :  { %v5006_v62 = vmul.f32 %v3991_v50, %v2617_v61 }
0x289c   :  { %2621 = vrot.lane.b32.xlu0 %v5006_v62, %s4095_s2  ;;  %v2909_v13 = vrot.slane %v5006_v62, 2 }
0x289d   :  { %v2626_v15 = vpop.permute.xlu1 %2625 }
0x290e   :  { %v2622_v41 = vpop.permute.xlu0 %2621 }
0x290f   :  { %v2628_v54 = vsel %vm64_vm0, %v2622_v41, %v2626_v15 }
0x2910   :  { %v2630_v42 = vrot.slane %v2628_v54, 2 }
0x2912   :  { %3780 = vmatmul.mubr.msk.f32.vlgmr.msra.gmra.mxu1 %vm658_vm4, %v2630_v42 }
0x2913   :  { %3805 = vmatpush3.msra.mxu1 %v4775_v24  ;;  %3820 = vmatprep.mubr.msk.f32.mxu1 %vm4091_vm1, %v4090_v11 }
0x2914   :  { %3806 = vmatprep.subr.mxu1 %v4090_v11 }
0x2915   :  { %3807 = vmatpush3.msra.mxu1 %v4784_v5 }
0x2916   :  { %3808 = vmatprep.subr.mxu1 %v4090_v11 }
0x2917   :  { %3809 = vmatpush3.msra.mxu1 %v4791_v48 }
0x2918   :  { %3810 = vmatprep.subr.mxu1 %v4090_v11 }
0x2919   :  { %3811 = vmatpush3.msra.mxu1 %v4798_v51 }
0x291a   :  { %3812 = vmatprep.subr.mxu1 %v4090_v11 }
0x291b   :  { %3813 = vmatpush3.msra.mxu1 %v4805_v52 }
0x291c   :  { %3814 = vmatprep.subr.mxu1 %v4090_v11 }
0x291d   :  { %3815 = vmatpush3.msra.mxu1 %v4812_v17 }
0x291e   :  { %3816 = vmatprep.subr.mxu1 %v4090_v11 }
0x291f   :  { %3817 = vmatpush3.msra.mxu1 %v4819_v60 }
0x2920   :  { %3818 = vmatprep.subr.mxu1 %v4090_v11 }
0x2921   :  { %3819 = vmatpush3.msra.mxu1 %v4933_v34 }
0x29d2   :  { %v2699_v24 = vpop.f32.mrf.mxu1 }
0x29d3   :  { %v2700_v5 = vadd.f32 %v4940_v37, %v2699_v24 }
0x29d4   :  { %v3781_v48 = vpop.f32.mrf.mxu1 }
0x29d5   :  { %3994 = vtanh.f32 %v2700_v5  ;;  %v3337_v52 = vmul.f32 -1.442695, %v2700_v5 }
0x29d7   :  { %3996 = vpow2.f32 %v3337_v52 }
0x29e2   :  { %v3995_v51 = vpop.eup %3994 }
0x29e3   :  { %2712 = vrot.lane.b32.xlu0 %v3995_v51, %s4094_s11 }
0x29e4   :  { %v3997_v16 = vpop.eup %3996 }
0x29e5   :  { %v2706_v17 = vadd.f32 1.0, %v3997_v16 }
0x29e7   :  { %3998 = vrcp.f32 %v2706_v17 }
0x29f4   :  { %v3999_v3 = vpop.eup %3998 }
0x29f5   :  { %v2710_v34 = vmul.f32 %v3999_v3, %v4946_v47 }
0x2a55   :  { %v2713_v57 = vpop.permute.xlu0 %2712 }
0x2a56   :  { %v2715_v60 = vmul.f32 %v3999_v3, %v2713_v57 }
0x2a58   :  { %2717 = vrot.lane.b32.xlu1 %v2715_v60, %s4095_s2 }
0x2aca   :  { %v2718_v53 = vpop.permute.xlu1 %2717 }
0x2acb   :  { %v5033_v43 = vadd.f32 %v2718_v53, %v2710_v34 }
0x2acd   :  { %4000 = vtanh.f32 %v5033_v43 }
0x2ada   :  { %v4001_v44 = vpop.eup %4000 }
0x2adb   :  { %2723 = vrot.lane.b32.xlu0 %v4001_v44, %s4094_s11 }
0x2b4d   :  { %v2724_v59 = vpop.permute.xlu0 %2723 }
0x2b4e   :  { %v5037_v45 = vmul.f32 %v3999_v3, %v2724_v59 }
0x2b50   :  { %2728 = vrot.lane.b32.xlu1 %v5037_v45, %s4095_s2 }
0x2bc2   :  { %v2729_v28 = vpop.permute.xlu1 %2728 }
0x2bc3   :  { %3791 = vmatmul.mubr.msk.f32.vlgmr.msra.gmra.mxu0 %vm64_vm0, %v2729_v28 }
0x2bc4   :  { %3794 = vmatpush3.msra.mxu0 %v4841_v58  ;;  %3801 = vmatprep.mubr.msk.f32.mxu0 %vm4091_vm1, %v4090_v11 }
0x2bc5   :  { %3795 = vmatprep.subr.mxu0 %v4090_v11 }
0x2bc6   :  { %3796 = vmatpush3.msra.mxu0 %v4850_v56 }
0x2bc7   :  { %3797 = vmatprep.subr.mxu0 %v4090_v11 }
0x2bc8   :  { %3798 = vmatpush3.msra.mxu0 %v4857_v32 }
0x2bc9   :  { %3799 = vmatprep.subr.mxu0 %v4090_v11 }
0x2bca   :  { %3800 = vmatpush3.msra.mxu0 %v4864_v40 }
0x2c83   :  { %v2798_v47 = vpop.f32.mrf.mxu0 }
0x2c84   :  { %v2809_v25 = vrot.slane %v2798_v47, %v4275_v22 }
0x2c85   :  { %v3792_v29 = vpop.f32.mrf.mxu0 }
0x2c86   :  { %v2810_v58 = vcombine.high %v2809_v25, %v2809_v25  ;;  %v2817_v20 = vrot.slane %v2809_v25, %v4275_v22 }
0x2c88   :  { %v2824_v30 = vrot.slane %v2810_v58, %v4275_v22  ;;  %v2828_v0 = vrot.slane %v2817_v20, %v4281_v27 }
0x2c8a   :  { %v2832_v56 = vrot.slane %v2824_v30, %v4281_v27  ;;  %v2835_v9 = vadd.f32 %v2828_v0, %v4289_v35 }
0x2c8c   :  { %v2836_v32 = vadd.f32 %v2832_v56, %v4291_v36  ;;  %4002 = vtanh.f32 %v2835_v9  ;;  %v2996_v56 = vrot.slane %v5000_v38, 6 }
0x2c8e   :  { %4004 = vtanh.f32 %v2836_v32 }
0x2c99   :  { %v4003_v11 = vpop.eup %4002 }
0x2c9a   :  { %v2839_v40 = vmul.f32 %v4709_v31, %v4003_v11 }
0x2c9b   :  { %v4005_v33 = vpop.eup %4004 }
0x2c9c   :  { %v2841_v49 = vsel %vm64_vm0, %v2839_v40, 0.0  ;;  %v2840_v12 = vmul.f32 %v4709_v31, %v4005_v33  ;;  %v3019_v40 = vrot.slane %v5037_v45, 4 }
0x2c9d   :  { %2842 = vadd.xlane.f32.xlu0 %v2841_v49 }
0x2c9e   :  { %v2844_v22 = vsel %vm64_vm0, %v2840_v12, 0.0 }
0x2c9f   :  { %2845 = vadd.xlane.f32.xlu1 %v2844_v22 }
0x2cb3   :  { %2910 = vrot.lane.b32.xlu0 %v2909_v13, %s4095_s2 }
0x2d26   :  { %v2843_v35 = vpop.xlane.xlu0 %2842 }
0x2d27   :  { %v2847_v36 = vmul.f32 1.442695, %v2843_v35 }
0x2d28   :  { %v2846_v14 = vpop.xlane.xlu1 %2845 }
0x2d29   :  { %4006 = vpow2.f32 %v2847_v36  ;;  %v2849_v39 = vmul.f32 1.442695, %v2846_v14 }
0x2d2a   :  { %v2911_v50 = vpop.permute.xlu0 %2910 }
0x2d2b   :  { %4008 = vpow2.f32 %v2849_v39  ;;  %3802 = vmatmul.mubr.msk.f32.vlgmr.msra.gmra.mxu0 %vm64_vm0, %v2911_v50 }
0x2d36   :  { %v4007_v46 = vpop.eup %4006 }
0x2d37   :  { %v2856_v31 = vrot.slane %v4007_v46, %v4372_v63 }
0x2d38   :  { %v4009_v6 = vpop.eup %4008 }
0x2d39   :  { %v2860_v7 = vrot.slane %v4009_v6, %v4372_v63 }
0x2d3b   :  { %v2861_v4 = vsel %vm498_vm2, %v2860_v7, %v2856_v31 }
0x2d3c   :  { %v2863_v10 = vsel %vm501_vm3, %v2861_v4, 0.0 }
0x2d3d   :  { %2864 = vadd.xlane.f32.xlu1 %v2863_v10  ;;  %v3126_v10 = vrot.slane %v4833_v55, 2  ;;  %v3143_v55 = vld [vmem:[%s5151_s14 + $0x10] sm:$0xff] }
0x2dc6   :  { %v2865_v18 = vpop.xlane.xlu1 %2864 }
0x2dc7   :  { %4010 = vrcp.f32 %v2865_v18 }
0x2dd4   :  { %v4011_v19 = vpop.eup %4010 }
0x2dd5   :  { %v2875_v61 = vrot.slane %v4011_v19, %v4379_v8  ;;  %v2871_v62 = vrot.slane %v4011_v19, %v4281_v27 }
0x2dd7   :  { %v2879_v15 = vmul.f32 %v4009_v6, %v2875_v61  ;;  %v2878_v41 = vmul.f32 %v4007_v46, %v2871_v62 }
0x2dd9   :  { %2887 = vperm.xlu0 %3845, %v2879_v15   ;;  %2882 = vperm.xlu1 %3844, %v2878_v41   ;;  %v3144_v15 = vld [vmem:[%s5151_s14 + $0x18] sm:$0xff]  ;;  %v3141_v41 = vld [vmem:[%s5151_s14] sm:$0xff] }
0x2dda   :  { %3823 = vmatprep.subr.mxu0 %v3144_v15 }
0x2ddb   :  { %3824 = vmatpush3.msra.mxu0 %v3144_v15 }
0x2ddc   :  { %3825 = vmatprep.subr.mxu0 %v3143_v55 }
0x2ddd   :  { %3826 = vmatpush3.msra.mxu0 %v3143_v55 }
0x2deb   :  { %v2980_v54 = vpop.f32.mrf.mxu0 }
0x2dec   :  { %v2985_v28 = vrot.slane %v2980_v54, 4  ;;  %v3128_v54 = vrot.slane %v5037_v45, 6 }
0x2ded   :  { %v3803_v42 = vpop.f32.mrf.mxu0 }
0x2e54   :  { %v2888_v24 = vpop.permute.xlu0 %2887  ;;  %v2883_v63 = vpop.permute.xlu1 %2882 }
0x2e55   :  { %v2891_v5 = vmul.f32 %v4272_v21, %v2888_v24  ;;  %v2890_v48 = vmul.f32 %v2883_v63, %v4277_v23 }
0x2e57   :  { %v2898_v51 = vrot.slane %v2891_v5, 4  ;;  %v2892_v52 = vrot.slane %v2890_v48, 4 }
0x2e59   :  { %v2899_v16 = vadd.f32 %v2898_v51, %v2891_v5  ;;  %v2893_v17 = vadd.f32 %v2892_v52, %v2890_v48  ;;  %v3139_v5 = vsel %vm3133_vm7, %v4950_v1, %v3128_v54 }
0x2e5b   :  { %v2900_v3 = vrot.slane %v2899_v16, 2  ;;  %v2894_v8 = vrot.slane %v2893_v17, 2 }
0x2e5d   :  { %v2901_v57 = vadd.f32 %v2900_v3, %v2899_v16  ;;  %v2895_v27 = vadd.f32 %v2894_v8, %v2893_v17 }
0x2e5f   :  { %v2902_v60 = vrot.slane %v2901_v57, 1  ;;  %v2896_v34 = vrot.slane %v2895_v27, 1 }
0x2e61   :  { %v2903_v53 = vadd.f32 %v2902_v60, %v2901_v57  ;;  %v2897_v44 = vadd.f32 %v2896_v34, %v2895_v27 }
0x2e63   :  { %v2906_v59 = vsel %vm1332_vm6, %v2903_v53, %v2897_v44 }
0x2e64   :  { %v2908_v47 = vadd.f32 %v2906_v59, %v4386_v26 }
0x2e66   :  { %v2987_v21 = vadd.f32 %v2985_v28, %v2908_v47 }
0x2e68   :  { %4012 = vtanh.f32 %v2987_v21  ;;  %v3340_v25 = vmul.f32 -1.442695, %v2987_v21 }
0x2e6a   :  { %4014 = vpow2.f32 %v3340_v25 }
0x2e75   :  { %v4013_v23 = vpop.eup %4012 }
0x2e76   :  { %3000 = vrot.lane.b32.xlu0 %v4013_v23, %s4094_s11 }
0x2e77   :  { %v4015_v29 = vpop.eup %4014 }
0x2e78   :  { %v2991_v58 = vadd.f32 1.0, %v4015_v29 }
0x2e7a   :  { %4016 = vrcp.f32 %v2991_v58 }
0x2e87   :  { %v4017_v20 = vpop.eup %4016 }
0x2e88   :  { %v2998_v9 = vmul.f32 %v4017_v20, %v2996_v56 }
0x2ee8   :  { %v3001_v30 = vpop.permute.xlu0 %3000 }
0x2ee9   :  { %v3003_v0 = vmul.f32 %v4017_v20, %v3001_v30 }
0x2eeb   :  { %3005 = vrot.lane.b32.xlu1 %v3003_v0, %s4095_s2 }
0x2f5d   :  { %v3006_v32 = vpop.permute.xlu1 %3005 }
0x2f5e   :  { %v5078_v26 = vadd.f32 %v3006_v32, %v2998_v9 }
0x2f60   :  { %4018 = vtanh.f32 %v5078_v26 }
0x2f6d   :  { %v4019_v11 = vpop.eup %4018 }
0x2f6e   :  { %3011 = vrot.lane.b32.xlu0 %v4019_v11, %s4094_s11 }
0x2f72   :  { %3020 = vrot.lane.b32.xlu0 %v3019_v40, %s4094_s11 }
0x2fe0   :  { %v3012_v33 = vpop.permute.xlu0 %3011 }
0x2fe1   :  { %v3014_v49 = vmul.f32 %v4017_v20, %v3012_v33 }
0x2fe3   :  { %3016 = vrot.lane.b32.xlu1 %v3014_v49, %s4095_s2 }
0x2fe4   :  { %v3021_v12 = vpop.permute.xlu0 %3020 }
0x3055   :  { %v3017_v38 = vpop.permute.xlu1 %3016 }
0x3056   :  { %v3023_v22 = vsel %vm64_vm0, %v3017_v38, %v3021_v12  ;;  %3242 = vst.msk [vmem:[#allocation2 - $0x4] sm:$0x30] %vm3241_vm10, %v3017_v38 }
0x3057   :  { %v3025_v13 = vrot.slane %v3023_v22, 4 }
0x3059   :  { %3821 = vmatmul.mubr.msk.f32.vlgmr.msra.gmra.mxu1 %vm658_vm4, %v3025_v13 }
0x3119   :  { %v3094_v35 = vpop.f32.mrf.mxu1 }
0x311a   :  { %v3095_v36 = vadd.f32 %v4940_v37, %v3094_v35  ;;  %v3138_v37 = vsel %vm3137_vm11, %v4686_v2, %v3126_v10  ;;  %v3142_v2 = vld [vmem:[%s5151_s14 + $0x8] sm:$0xff]  ;;  %s4097_s14 = smov [#allocation2]  }
0x311b   :  { %v3822_v14 = vpop.f32.mrf.mxu1  ;;  %3827 = vmatprep.subr.mxu0 %v3142_v2  ;;  %s3267_s23 = sshll.u32 %s4097_s14, 4  ;;  %s3268_s23 = int_to_ptr.vmem [resolvable:$true] %s3267_s23 }
0x311c   :  { %4020 = vtanh.f32 %v3095_v36  ;;  %v3342_v50 = vmul.f32 -1.442695, %v3095_v36  ;;  %3828 = vmatpush3.msra.mxu0 %v3142_v2  ;;  %s4046_s7 = scalar_lea.vmem %s3268_s23, 64  ;;  %p4051_p1 = scmp.lt.s32.totalorder %s3268_s23, %s3268_s23 }
0x311d   :  { %3829 = vmatprep.subr.mxu0 %v3141_v41  ;;  %p4047_p0 = scmp.ne.s32.totalorder %s3268_s23, %s4046_s7  ;;  %p4052_p2 = scmp.lt.s32.totalorder %s4046_s7, %s4046_s7 }
0x311e   :  { %4022 = vpow2.f32 %v3342_v50  ;;  %3830 = vmatpush3.msra.mxu0 %v3141_v41 }
0x311f   :  { %p4053_p3 = por %p4052_p2, %p4051_p1 }
0x3121   :  { %p4054_p4 = pnand %p4053_p3, %p4047_p0 }
0x3129   :  { %v4021_v39 = vpop.eup %4020 }
0x312a   :  { %3107 = vrot.lane.b32.xlu1 %v4021_v39, %s4094_s11 }
0x312b   :  { %v4023_v46 = vpop.eup %4022 }
0x312c   :  { %v3101_v6 = vadd.f32 1.0, %v4023_v46 }
0x312e   :  { %4024 = vrcp.f32 %v3101_v6 }
0x313b   :  { %v4025_v31 = vpop.eup %4024 }
0x313c   :  { %v3105_v18 = vmul.f32 %v4025_v31, %v5033_v43 }
0x319c   :  { %v3108_v7 = vpop.permute.xlu1 %3107 }
0x319d   :  { %v3110_v4 = vmul.f32 %v4025_v31, %v3108_v7 }
0x319f   :  { %3112 = vrot.lane.b32.xlu0 %v3110_v4, %s4095_s2 }
0x31a3   :  { %3154 = vrot.lane.b32.xlu0 %v3138_v37, %s4095_s2 }
0x3211   :  { %v3113_v19 = vpop.permute.xlu0 %3112 }
0x3212   :  { %v3115_v61 = vadd.f32 %v3113_v19, %v3105_v18 }
0x3214   :  { %4026 = vtanh.f32 %v3115_v61 }
0x3215   :  { %v3155_v62 = vpop.permute.xlu0 %3154 }
0x3216   :  { %3831 = vmatprep.mubr.msk.f32.mxu0 %vm64_vm0, %v3155_v62 }
0x3221   :  { %v4027_v43 = vpop.eup %4026 }
0x3222   :  { %3118 = vrot.lane.b32.xlu1 %v4027_v43, %s4094_s11  ;;  %s4096_s11 = smov 96  }
0x3294   :  { %v3119_v42 = vpop.permute.xlu1 %3118 }
0x3295   :  { %v3121_v24 = vmul.f32 %v4025_v31, %v3119_v42 }
0x3297   :  { %v3131_v63 = vrot.slane %v3121_v24, 4  ;;  %3243 = vrot.lane.b32.xlu0 %v3121_v24, %s4095_s2 }
0x3299   :  { %v3140_v48 = vsel %vm3135_vm8, %v3139_v5, %v3131_v63 }
0x329a   :  { %3156 = vrot.lane.b32.xlu1 %v3140_v48, %s4095_s2 }
0x329b   :  { %3255 = vrot.lane.b32.xlu0 %v3115_v61, %s4096_s11 }
0x329e   :  { %3250 = vrot.lane.b32.xlu1 %v5078_v26, %s4096_s11 }
0x3309   :  { %v3244_v51 = vpop.permute.xlu0 %3243 }
0x330a   :  { %3248 = vst.msk [vmem:[#allocation2 + $0x2] sm:$0x3] %vm3247_vm12, %v3244_v51 }
0x330c   :  { %v3157_v45 = vpop.permute.xlu1 %3156 }
0x330d   :  { %v3256_v52 = vpop.permute.xlu0 %3255  ;;  %3832 = vmatmul.mubr.msk.f32.vlgmr.msra.gmra.mxu0 %vm64_vm0, %v3157_v45 }
0x330e   :  { %3259 = vst.msk [vmem:[#allocation4 + $0x2] sm:$0x3] %vm3247_vm12, %v3256_v52 }
0x3310   :  { %v3251_v16 = vpop.permute.xlu1 %3250 }
0x3311   :  { %3253 = vst.msk [vmem:[#allocation4 - $0x4] sm:$0x30] %vm3241_vm10, %v3251_v16 }
0x3312   :  { %4057 = shalt.err (!%p4054_p4)
}
0x3313   :  { %s4099_s25 = smov 2   ;;  %s4066_s6 = scalar_lea.vmem %s3280_s24, 64 }
0x3314   :  { %3273 = dma.vmem_to_hbm [thread:$0]  %s3268_s23, 64, %s5154_s17, [#allocation3], %s4095_s2, %s4095_s2, %s4099_s25  }
0x3315   :  { %p4067_p5 = scmp.ne.s32.totalorder %s3280_s24, %s4066_s6  ;;  %p4071_p6 = scmp.lt.s32.totalorder %s3280_s24, %s3280_s24 }
0x3316   :  { %p4072_p7 = scmp.lt.s32.totalorder %s4066_s6, %s4066_s6 }
0x3318   :  { %p4073_p8 = por %p4072_p7, %p4071_p6 }
0x331a   :  { %p4074_p9 = pnand %p4073_p8, %p4067_p5 }
0x331c   :  { %4077 = shalt.err (!%p4074_p9)
}
0x331d   :  { %3285 = dma.vmem_to_hbm [thread:$0]  %s3280_s24, 64, %s5155_s18, [#allocation5], %s4095_s2, %s4095_s2, %s4099_s25   ;;  %vm3239_vm13 = vcmask 128000   ;;  %vm3237_vm14 = vcmask 130048  }
0x331e   :  { %v3343_v1 = vld [vmem:[%s5152_s15] ss:$0 sm:$0xff] }
0x33cd   :  { %v3833_v17 = vpop.f32.mrf.mxu0 }
0x33ce   :  { %v3234_v3 = vadd.f32 %v3833_v17, %v3343_v1 }
0x33cf   :  { %v3228_v8 = vpop.f32.mrf.mxu0 }
0x33d0   :  { %3240 = vst.msk [vmem:[%s5153_s16 + $0x8] sm:$0x3f] %vm3239_vm13, %v3234_v3  ;;  %v3229_v57 = vadd.f32 %v3343_v1, %v3228_v8 }
0x33d2   :  { %3238 = vst.msk [vmem:[%s5153_s16] sm:$0xff] %vm3237_vm14, %v3229_v57 }
0x33d3   :  { %4086 = dma.done.wait [#allocation3], 64  }
0x33d4   :  { %4087 = vsyncadd [#allocation3], 4294967232 }
0x33d5   :  { %4088 = dma.done.wait [#allocation5], 64  }
0x33d6   :  { %4089 = vsyncadd [#allocation5], 4294967232 }
0x33d7   :  { %3294 = vsyncpa [#allocation3], 1 }
0x33d8   :  { %3295 = vsyncpa [#allocation5], 1 }

</bundles_post_ra>
